<compile_context>
chip_gen: v7x
topology: tpu7x:2x2x1
jax: 0.10.0
libtpu: 0.0.40
codegen_flags: <defaults>
</compile_context>

<pallas_src>
import jax
import jax.numpy as jnp
from jax.experimental import pallas as pl
from jax.experimental.pallas import tpu as pltpu


# --------------------------- Pallas kernel ---------------------------------
def gat_old_kernel(x_ref, mask_ref, pool_ref,
                   w1_ref, as1_ref, ad1_ref, b1_ref,
                   w2_ref, as2_ref, ad2_ref, b2_ref,
                   out_ref):
    x = x_ref[...]                       # (N, F)
    mask = mask_ref[...]                 # (N, N), mask[i, j] = 1 iff edge j->i (incl. self loop)
    neg = jnp.float32(-1e30)

    def gat_conv(h, w, a_src, a_dst, b):
        heads, out_ch = a_src.shape
        n = h.shape[0]
        # Fused projection over all heads; x' reused below for logits + aggregation.
        xp = jnp.dot(h, w, preferred_element_type=jnp.float32)       # (N, heads*out_ch)
        xp_h = xp.reshape(n, heads, out_ch)                          # (N, H, O)

        # Attention logits (VPU multiply + minor-dim reduce; tiny transposes).
        al_src = jnp.sum(xp_h * a_src[None, :, :], axis=-1)          # (N, H)
        al_dst = jnp.sum(xp_h * a_dst[None, :, :], axis=-1)          # (N, H)
        e = al_dst.T[:, :, None] + al_src.T[:, None, :]              # (H, N_i, N_j)
        e = jnp.where(e > 0, e, 0.2 * e)                             # leaky_relu(0.2)
        e = jnp.where(mask[None, :, :] > 0, e, neg)                  # mask non-edges

        # Masked softmax over source nodes j (per destination i, per head).
        e = e - jnp.max(e, axis=-1, keepdims=True)
        p = jnp.exp(e)
        attn = p * pl.reciprocal(jnp.sum(p, axis=-1, keepdims=True), approx=False)

        # Per-head aggregation as one batched matmul on lane-major operands.
        xp_t = jnp.transpose(xp_h, (1, 0, 2))                        # (H, N, O)
        out = jnp.einsum('hij,hjo->hio', attn, xp_t,
                         preferred_element_type=jnp.float32)         # (H, N, O)
        out = jnp.transpose(out, (1, 0, 2)).reshape(n, heads * out_ch)  # concat heads
        return out + b                                               # bias (1, heads*out_ch)

    # ---- layer 1: GATConv(F -> hid, heads=H1, concat) + ELU --------------
    h1 = gat_conv(x, w1_ref[...], as1_ref[...], ad1_ref[...], b1_ref[...])
    h1 = jnp.where(h1 > 0, h1, jnp.exp(jnp.minimum(h1, 0.0)) - 1.0)  # ELU(alpha=1)

    # ---- layer 2: GATConv(H1*hid -> C, heads=1) ---------------------------
    h2 = gat_conv(h1, w2_ref[...], as2_ref[...], ad2_ref[...], b2_ref[...])

    # ---- global mean pool (dense pooling matrix) + class softmax ----------
    pooled = jnp.dot(pool_ref[...], h2, preferred_element_type=jnp.float32)  # (G, C)
    z = pooled - jnp.max(pooled, axis=-1, keepdims=True)
    ez = jnp.exp(z)
    out_ref[...] = ez * pl.reciprocal(jnp.sum(ez, axis=-1, keepdims=True), approx=False)


# ------------------------------ wrapper ------------------------------------
def gat_old_forward(x, mask, pool, w1, a1_src, a1_dst, b1, w2, a2_src, a2_dst, b2):
    # All operands are tiny -> one grid-less call, everything VMEM-resident.
    # For large N: add grid=(pl.cdiv(N, tn),) tiling the destination-node axis
    # of mask / intermediates with dimension_semantics=("parallel",).
    G = pool.shape[0]
    C = w2.shape[1]
    vmem = lambda: pl.BlockSpec(memory_space=pltpu.MemorySpace.VMEM)
    return pl.pallas_call(
        gat_old_kernel,
        out_shape=jax.ShapeDtypeStruct((G, C), jnp.float32),
        in_specs=[vmem() for _ in range(11)],
        out_specs=vmem(),
    )(x, mask, pool, w1, a1_src, a1_dst, b1, w2, a2_src, a2_dst, b2)


# ----------------- host-side graph preprocessing (wrapper-level) -----------
def edges_to_mask(edge_index, n):
    # edge_index[0] = source j, edge_index[1] = destination i (PyG flow).
    m = jnp.zeros((n, n), jnp.float32)
    m = m.at[edge_index[1], edge_index[0]].set(1.0)
    return jnp.maximum(m, jnp.eye(n, dtype=jnp.float32))   # add self loops


def batch_to_pool(batch, g):
    onehot = (batch[None, :] == jnp.arange(g)[:, None]).astype(jnp.float32)  # (G, N)
    return onehot / jnp.sum(onehot, axis=1, keepdims=True)                    # mean pool


# ---------------- pure-JAX reference (for verification) --------------------
def _ref_forward(x, mask, pool, w1, a1s, a1d, b1, w2, a2s, a2d, b2):
    P = jax.lax.Precision.HIGHEST

    def conv(h, w, a_src, a_dst, b):
        heads, out_ch = a_src.shape
        n = h.shape[0]
        xp = jnp.dot(h, w, precision=P).reshape(n, heads, out_ch)
        als = jnp.sum(xp * a_src[None], axis=-1)
        ald = jnp.sum(xp * a_dst[None], axis=-1)
        e = ald.T[:, :, None] + als.T[:, None, :]
        e = jax.nn.leaky_relu(e, 0.2)
        e = jnp.where(mask[None] > 0.0, e, -1e30)
        attn = jax.nn.softmax(e, axis=-1)
        out = jnp.einsum('hij,hjo->iho', attn, jnp.transpose(xp, (1, 0, 2)),
                         precision=P)
        return out.reshape(n, heads * out_ch) + b

    h1 = jax.nn.elu(conv(x, w1, a1s, a1d, b1))
    h2 = conv(h1, w2, a2s, a2d, b2)
    logits = jnp.dot(pool, h2, precision=P)
    return jax.nn.softmax(logits, axis=-1)


if __name__ == "__main__":
    # dataset_num_node_features=32, n_hidden_channels=8, first_heads=8,
    # output_heads=1, dataset_num_classes=4, 2 graphs of 8 nodes each.
    N, F_IN, HID, HEADS1, C, G = 16, 32, 8, 8, 4, 2
    key = jax.random.PRNGKey(0)
    keys = jax.random.split(key, 10)

    x = jax.random.normal(keys[0], (N, F_IN), jnp.float32)
    batch = jnp.repeat(jnp.arange(G), N // G)                 # node -> graph id

    # Random undirected edges within each graph -> edge_index (2, E).
    rand = jax.random.uniform(keys[1], (N, N))
    same_graph = batch[:, None] == batch[None, :]
    adj = (rand > 0.7) & same_graph & (~jnp.eye(N, dtype=bool))
    adj = adj | adj.T
    src, dst = jnp.nonzero(adj)
    edge_index = jnp.stack([src, dst])

    mask = edges_to_mask(edge_index, N)       # dense attention mask w/ self loops
    pool = batch_to_pool(batch, G)            # global_mean_pool as a matmul

    def init(k, shape, fan_in):
        return jax.random.normal(k, shape, jnp.float32) / jnp.sqrt(float(fan_in))

    # Weights are created directly in (in, out) layout (pre-transposed host-side).
    w1 = init(keys[2], (F_IN, HEADS1 * HID), F_IN)
    a1_src = init(keys[3], (HEADS1, HID), HID)
    a1_dst = init(keys[4], (HEADS1, HID), HID)
    b1 = 0.1 * jax.random.normal(keys[5], (1, HEADS1 * HID), jnp.float32)
    w2 = init(keys[6], (HEADS1 * HID, C), HEADS1 * HID)
    a2_src = init(keys[7], (1, C), C)
    a2_dst = init(keys[8], (1, C), C)
    b2 = 0.1 * jax.random.normal(keys[9], (1, C), jnp.float32)

    out = gat_old_forward(x, mask, pool, w1, a1_src, a1_dst, b1,
                          w2, a2_src, a2_dst, b2)
    jax.block_until_ready(out)

    ref = _ref_forward(x, mask, pool, w1, a1_src, a1_dst, b1,
                       w2, a2_src, a2_dst, b2)

    assert out.shape == (G, C), "bad output shape"
    assert jnp.allclose(jnp.sum(out, axis=-1), 1.0, atol=1e-5), "softmax rows != 1"
    assert jnp.allclose(out, ref, atol=1e-4, rtol=1e-4), "output mismatch vs reference"

    print("KERNEL_OK")
</pallas_src>

<mosaic_0001>
module attributes {stable_mosaic.version = 11 : i64} {
  func.func @gat_old_kernel(%arg0: memref<16x32xf32, #tpu.memory_space<vmem>>, %arg1: memref<16x16xf32, #tpu.memory_space<vmem>>, %arg2: memref<2x16xf32, #tpu.memory_space<vmem>>, %arg3: memref<32x64xf32, #tpu.memory_space<vmem>>, %arg4: memref<8x8xf32, #tpu.memory_space<vmem>>, %arg5: memref<8x8xf32, #tpu.memory_space<vmem>>, %arg6: memref<1x64xf32, #tpu.memory_space<vmem>>, %arg7: memref<64x4xf32, #tpu.memory_space<vmem>>, %arg8: memref<1x4xf32, #tpu.memory_space<vmem>>, %arg9: memref<1x4xf32, #tpu.memory_space<vmem>>, %arg10: memref<1x4xf32, #tpu.memory_space<vmem>>, %arg11: memref<2x4xf32, #tpu.memory_space<vmem>>) attributes {dimension_semantics = [], scalar_prefetch = 0 : i64, scratch_operands = 0 : i64, tpu.core_type = #tpu.core_type<tc>} {
    %c0 = arith.constant 0 : index
    %c0_0 = arith.constant 0 : index
    %0 = vector.load %arg0[%c0, %c0_0] : memref<16x32xf32, #tpu.memory_space<vmem>>, vector<16x32xf32>
    %c0_1 = arith.constant 0 : index
    %c0_2 = arith.constant 0 : index
    %1 = vector.load %arg1[%c0_1, %c0_2] : memref<16x16xf32, #tpu.memory_space<vmem>>, vector<16x16xf32>
    %c0_3 = arith.constant 0 : index
    %c0_4 = arith.constant 0 : index
    %2 = vector.load %arg3[%c0_3, %c0_4] : memref<32x64xf32, #tpu.memory_space<vmem>>, vector<32x64xf32>
    %c0_5 = arith.constant 0 : index
    %c0_6 = arith.constant 0 : index
    %3 = vector.load %arg4[%c0_5, %c0_6] : memref<8x8xf32, #tpu.memory_space<vmem>>, vector<8x8xf32>
    %c0_7 = arith.constant 0 : index
    %c0_8 = arith.constant 0 : index
    %4 = vector.load %arg5[%c0_7, %c0_8] : memref<8x8xf32, #tpu.memory_space<vmem>>, vector<8x8xf32>
    %c0_9 = arith.constant 0 : index
    %c0_10 = arith.constant 0 : index
    %5 = vector.load %arg6[%c0_9, %c0_10] : memref<1x64xf32, #tpu.memory_space<vmem>>, vector<1x64xf32>
    %cst = arith.constant dense<0.000000e+00> : vector<16x64xf32>
    %6 = tpu.matmul %0, %2, %cst {dimension_numbers = #tpu.dot_dimension_numbers<[1], [0], [0], [1], [0, 0, 1, 1], [], []>} : vector<16x32xf32>, vector<32x64xf32>, vector<16x64xf32> -> vector<16x64xf32>
    %7 = vector.shape_cast %6 : vector<16x64xf32> to vector<16x8x8xf32>
    %8 = vector.shape_cast %3 : vector<8x8xf32> to vector<1x8x8xf32>
    %9 = vector.broadcast %8 : vector<1x8x8xf32> to vector<16x8x8xf32>
    %10 = arith.mulf %7, %9 : vector<16x8x8xf32>
    %cst_11 = arith.constant dense<0.000000e+00> : vector<16x8xf32>
    %11 = vector.multi_reduction <add>, %10, %cst_11 [2] : vector<16x8x8xf32> to vector<16x8xf32>
    %12 = vector.shape_cast %4 : vector<8x8xf32> to vector<1x8x8xf32>
    %13 = vector.broadcast %12 : vector<1x8x8xf32> to vector<16x8x8xf32>
    %14 = arith.mulf %7, %13 : vector<16x8x8xf32>
    %cst_12 = arith.constant dense<0.000000e+00> : vector<16x8xf32>
    %15 = vector.multi_reduction <add>, %14, %cst_12 [2] : vector<16x8x8xf32> to vector<16x8xf32>
    %16 = tpu.transpose %15, [1, 0] : vector<16x8xf32> -> vector<8x16xf32>
    %17 = vector.shape_cast %16 : vector<8x16xf32> to vector<8x16x1xf32>
    %18 = tpu.transpose %11, [1, 0] : vector<16x8xf32> -> vector<8x16xf32>
    %19 = vector.shape_cast %18 : vector<8x16xf32> to vector<8x1x16xf32>
    %20 = vector.broadcast %17 : vector<8x16x1xf32> to vector<8x16x16xf32>
    %21 = vector.broadcast %19 : vector<8x1x16xf32> to vector<8x16x16xf32>
    %22 = arith.addf %20, %21 : vector<8x16x16xf32>
    %cst_13 = arith.constant 0.000000e+00 : f32
    %23 = vector.broadcast %cst_13 : f32 to vector<8x16x16xf32>
    %24 = arith.cmpf ogt, %22, %23 : vector<8x16x16xf32>
    %cst_14 = arith.constant 2.000000e-01 : f32
    %25 = vector.broadcast %cst_14 : f32 to vector<8x16x16xf32>
    %26 = arith.mulf %25, %22 : vector<8x16x16xf32>
    %27 = arith.select %24, %22, %26 : vector<8x16x16xi1>, vector<8x16x16xf32>
    %28 = vector.shape_cast %1 : vector<16x16xf32> to vector<1x16x16xf32>
    %cst_15 = arith.constant 0.000000e+00 : f32
    %29 = vector.broadcast %cst_15 : f32 to vector<1x16x16xf32>
    %30 = arith.cmpf ogt, %28, %29 : vector<1x16x16xf32>
    %cst_16 = arith.constant -1.000000e+30 : f32
    %31 = vector.shape_cast %30 : vector<1x16x16xi1> to vector<1x16x16xi1>
    %32 = vector.broadcast %31 : vector<1x16x16xi1> to vector<8x16x16xi1>
    %33 = vector.broadcast %cst_16 : f32 to vector<8x16x16xf32>
    %34 = arith.select %32, %27, %33 : vector<8x16x16xi1>, vector<8x16x16xf32>
    %cst_17 = arith.constant dense<0xFF800000> : vector<8x16xf32>
    %35 = vector.multi_reduction <maximumf>, %34, %cst_17 [2] : vector<8x16x16xf32> to vector<8x16xf32>
    %36 = vector.shape_cast %35 : vector<8x16xf32> to vector<8x16x1xf32>
    %37 = vector.broadcast %36 : vector<8x16x1xf32> to vector<8x16x16xf32>
    %38 = arith.subf %34, %37 : vector<8x16x16xf32>
    %39 = math.exp %38 : vector<8x16x16xf32>
    %cst_18 = arith.constant dense<0.000000e+00> : vector<8x16xf32>
    %40 = vector.multi_reduction <add>, %39, %cst_18 [2] : vector<8x16x16xf32> to vector<8x16xf32>
    %41 = vector.shape_cast %40 : vector<8x16xf32> to vector<8x16x1xf32>
    %42 = tpu.reciprocal %41 : vector<8x16x1xf32> -> vector<8x16x1xf32>
    %43 = vector.broadcast %42 : vector<8x16x1xf32> to vector<8x16x16xf32>
    %44 = arith.mulf %39, %43 : vector<8x16x16xf32>
    %45 = tpu.transpose %7, [1, 0, 2] : vector<16x8x8xf32> -> vector<8x16x8xf32>
    "tpu.trace_start"() <{level = 10 : i32, message = "hij,hjo->hio"}> : () -> ()
    %cst_19 = arith.constant dense<0.000000e+00> : vector<8x16x8xf32>
    %46 = tpu.matmul %44, %45, %cst_19 {dimension_numbers = #tpu.dot_dimension_numbers<[2], [1], [1], [2], [0, 0, 0, 1, 1, 2], [0], [0]>} : vector<8x16x16xf32>, vector<8x16x8xf32>, vector<8x16x8xf32> -> vector<8x16x8xf32>
    "tpu.trace_stop"() : () -> ()
    %47 = tpu.transpose %46, [1, 0, 2] : vector<8x16x8xf32> -> vector<16x8x8xf32>
    %48 = vector.shape_cast %47 : vector<16x8x8xf32> to vector<16x64xf32>
    %49 = vector.broadcast %5 : vector<1x64xf32> to vector<16x64xf32>
    %50 = arith.addf %48, %49 : vector<16x64xf32>
    %cst_20 = arith.constant 0.000000e+00 : f32
    %51 = vector.broadcast %cst_20 : f32 to vector<16x64xf32>
    %52 = arith.cmpf ogt, %50, %51 : vector<16x64xf32>
    %cst_21 = arith.constant 0.000000e+00 : f32
    %53 = vector.broadcast %cst_21 : f32 to vector<16x64xf32>
    %54 = arith.minimumf %50, %53 : vector<16x64xf32>
    %55 = math.exp %54 : vector<16x64xf32>
    %cst_22 = arith.constant 1.000000e+00 : f32
    %56 = vector.broadcast %cst_22 : f32 to vector<16x64xf32>
    %57 = arith.subf %55, %56 : vector<16x64xf32>
    %58 = arith.select %52, %50, %57 : vector<16x64xi1>, vector<16x64xf32>
    %c0_23 = arith.constant 0 : index
    %c0_24 = arith.constant 0 : index
    %59 = vector.load %arg7[%c0_23, %c0_24] : memref<64x4xf32, #tpu.memory_space<vmem>>, vector<64x4xf32>
    %c0_25 = arith.constant 0 : index
    %c0_26 = arith.constant 0 : index
    %60 = vector.load %arg8[%c0_25, %c0_26] : memref<1x4xf32, #tpu.memory_space<vmem>>, vector<1x4xf32>
    %c0_27 = arith.constant 0 : index
    %c0_28 = arith.constant 0 : index
    %61 = vector.load %arg9[%c0_27, %c0_28] : memref<1x4xf32, #tpu.memory_space<vmem>>, vector<1x4xf32>
    %c0_29 = arith.constant 0 : index
    %c0_30 = arith.constant 0 : index
    %62 = vector.load %arg10[%c0_29, %c0_30] : memref<1x4xf32, #tpu.memory_space<vmem>>, vector<1x4xf32>
    %cst_31 = arith.constant dense<0.000000e+00> : vector<16x4xf32>
    %63 = tpu.matmul %58, %59, %cst_31 {dimension_numbers = #tpu.dot_dimension_numbers<[1], [0], [0], [1], [0, 0, 1, 1], [], []>} : vector<16x64xf32>, vector<64x4xf32>, vector<16x4xf32> -> vector<16x4xf32>
    %64 = vector.shape_cast %63 : vector<16x4xf32> to vector<16x1x4xf32>
    %65 = vector.shape_cast %60 : vector<1x4xf32> to vector<1x1x4xf32>
    %66 = vector.broadcast %65 : vector<1x1x4xf32> to vector<16x1x4xf32>
    %67 = arith.mulf %64, %66 : vector<16x1x4xf32>
    %cst_32 = arith.constant dense<0.000000e+00> : vector<16x1xf32>
    %68 = vector.multi_reduction <add>, %67, %cst_32 [2] : vector<16x1x4xf32> to vector<16x1xf32>
    %69 = vector.shape_cast %61 : vector<1x4xf32> to vector<1x1x4xf32>
    %70 = vector.broadcast %69 : vector<1x1x4xf32> to vector<16x1x4xf32>
    %71 = arith.mulf %64, %70 : vector<16x1x4xf32>
    %cst_33 = arith.constant dense<0.000000e+00> : vector<16x1xf32>
    %72 = vector.multi_reduction <add>, %71, %cst_33 [2] : vector<16x1x4xf32> to vector<16x1xf32>
    %73 = tpu.transpose %72, [1, 0] : vector<16x1xf32> -> vector<1x16xf32>
    %74 = vector.shape_cast %73 : vector<1x16xf32> to vector<1x16x1xf32>
    %75 = tpu.transpose %68, [1, 0] : vector<16x1xf32> -> vector<1x16xf32>
    %76 = vector.shape_cast %75 : vector<1x16xf32> to vector<1x1x16xf32>
    %77 = vector.broadcast %74 : vector<1x16x1xf32> to vector<1x16x16xf32>
    %78 = vector.broadcast %76 : vector<1x1x16xf32> to vector<1x16x16xf32>
    %79 = arith.addf %77, %78 : vector<1x16x16xf32>
    %cst_34 = arith.constant 0.000000e+00 : f32
    %80 = vector.broadcast %cst_34 : f32 to vector<1x16x16xf32>
    %81 = arith.cmpf ogt, %79, %80 : vector<1x16x16xf32>
    %cst_35 = arith.constant 2.000000e-01 : f32
    %82 = vector.broadcast %cst_35 : f32 to vector<1x16x16xf32>
    %83 = arith.mulf %82, %79 : vector<1x16x16xf32>
    %84 = arith.select %81, %79, %83 : vector<1x16x16xi1>, vector<1x16x16xf32>
    %85 = vector.shape_cast %1 : vector<16x16xf32> to vector<1x16x16xf32>
    %cst_36 = arith.constant 0.000000e+00 : f32
    %86 = vector.broadcast %cst_36 : f32 to vector<1x16x16xf32>
    %87 = arith.cmpf ogt, %85, %86 : vector<1x16x16xf32>
    %cst_37 = arith.constant -1.000000e+30 : f32
    %88 = vector.broadcast %cst_37 : f32 to vector<1x16x16xf32>
    %89 = arith.select %87, %84, %88 : vector<1x16x16xi1>, vector<1x16x16xf32>
    %cst_38 = arith.constant dense<0xFF800000> : vector<1x16xf32>
    %90 = vector.multi_reduction <maximumf>, %89, %cst_38 [2] : vector<1x16x16xf32> to vector<1x16xf32>
    %91 = vector.shape_cast %90 : vector<1x16xf32> to vector<1x16x1xf32>
    %92 = vector.broadcast %91 : vector<1x16x1xf32> to vector<1x16x16xf32>
    %93 = arith.subf %89, %92 : vector<1x16x16xf32>
    %94 = math.exp %93 : vector<1x16x16xf32>
    %cst_39 = arith.constant dense<0.000000e+00> : vector<1x16xf32>
    %95 = vector.multi_reduction <add>, %94, %cst_39 [2] : vector<1x16x16xf32> to vector<1x16xf32>
    %96 = vector.shape_cast %95 : vector<1x16xf32> to vector<1x16x1xf32>
    %97 = tpu.reciprocal %96 : vector<1x16x1xf32> -> vector<1x16x1xf32>
    %98 = vector.broadcast %97 : vector<1x16x1xf32> to vector<1x16x16xf32>
    %99 = arith.mulf %94, %98 : vector<1x16x16xf32>
    %100 = tpu.transpose %64, [1, 0, 2] : vector<16x1x4xf32> -> vector<1x16x4xf32>
    "tpu.trace_start"() <{level = 10 : i32, message = "hij,hjo->hio"}> : () -> ()
    %cst_40 = arith.constant dense<0.000000e+00> : vector<1x16x4xf32>
    %101 = tpu.matmul %99, %100, %cst_40 {dimension_numbers = #tpu.dot_dimension_numbers<[2], [1], [1], [2], [0, 0, 0, 1, 1, 2], [0], [0]>} : vector<1x16x16xf32>, vector<1x16x4xf32>, vector<1x16x4xf32> -> vector<1x16x4xf32>
    "tpu.trace_stop"() : () -> ()
    %102 = tpu.transpose %101, [1, 0, 2] : vector<1x16x4xf32> -> vector<16x1x4xf32>
    %103 = vector.shape_cast %102 : vector<16x1x4xf32> to vector<16x4xf32>
    %104 = vector.broadcast %62 : vector<1x4xf32> to vector<16x4xf32>
    %105 = arith.addf %103, %104 : vector<16x4xf32>
    %c0_41 = arith.constant 0 : index
    %c0_42 = arith.constant 0 : index
    %106 = vector.load %arg2[%c0_41, %c0_42] : memref<2x16xf32, #tpu.memory_space<vmem>>, vector<2x16xf32>
    %cst_43 = arith.constant dense<0.000000e+00> : vector<2x4xf32>
    %107 = tpu.matmul %106, %105, %cst_43 {dimension_numbers = #tpu.dot_dimension_numbers<[1], [0], [0], [1], [0, 0, 1, 1], [], []>} : vector<2x16xf32>, vector<16x4xf32>, vector<2x4xf32> -> vector<2x4xf32>
    %cst_44 = arith.constant dense<0xFF800000> : vector<2xf32>
    %108 = vector.multi_reduction <maximumf>, %107, %cst_44 [1] : vector<2x4xf32> to vector<2xf32>
    %109 = vector.shape_cast %108 : vector<2xf32> to vector<2x1xf32>
    %110 = vector.broadcast %109 : vector<2x1xf32> to vector<2x4xf32>
    %111 = arith.subf %107, %110 : vector<2x4xf32>
    %112 = math.exp %111 : vector<2x4xf32>
    %cst_45 = arith.constant dense<0.000000e+00> : vector<2xf32>
    %113 = vector.multi_reduction <add>, %112, %cst_45 [1] : vector<2x4xf32> to vector<2xf32>
    %114 = vector.shape_cast %113 : vector<2xf32> to vector<2x1xf32>
    %115 = tpu.reciprocal %114 : vector<2x1xf32> -> vector<2x1xf32>
    %116 = vector.broadcast %115 : vector<2x1xf32> to vector<2x4xf32>
    %117 = arith.mulf %112, %116 : vector<2x4xf32>
    %c0_46 = arith.constant 0 : index
    %c0_47 = arith.constant 0 : index
    %118 = vector.load %arg11[%c0_46, %c0_47] : memref<2x4xf32, #tpu.memory_space<vmem>>, vector<2x4xf32>
    tpu.vector_store %arg11[%c0_46, %c0_47], %117 {strides = array<i32>} : memref<2x4xf32, #tpu.memory_space<vmem>>, vector<2x4xf32>,
    return
  }
}

</mosaic_0001>

<bundles_post_ra>
// kernel: tpu_custom_call.1
= control target key start
LH: loop header
LB: loop body
LE: loop exit
PB: predicated region body
PF: predicated region fallthrough
CT: control target
= control target key end

     0   :  { %vm50_vm0 = vcmask 261120   ;;  %s5445_s0 = inlined_call_operand.vmem [shape: f32[16,32], index: 0, kind: input, shape index: {}]   ;;  %s5446_s1 = inlined_call_operand.vmem [shape: f32[16,16], index: 1, kind: input, shape index: {}]   ;;  %s5447_s2 = inlined_call_operand.vmem [shape: f32[2,16], index: 2, kind: input, shape index: {}]   ;;  %s5448_s3 = inlined_call_operand.vmem [shape: f32[32,64], index: 3, kind: input, shape index: {}]   ;;  %s5449_s4 = inlined_call_operand.vmem [shape: f32[8,8], index: 4, kind: input, shape index: {}]   ;;  %s5450_s5 = inlined_call_operand.vmem [shape: f32[8,8], index: 5, kind: input, shape index: {}]   ;;  %s5451_s6 = inlined_call_operand.vmem [shape: f32[1,64], index: 6, kind: input, shape index: {}]   ;;  %s5452_s7 = inlined_call_operand.vmem [shape: f32[64,4], index: 7, kind: input, shape index: {}]   ;;  %s5453_s8 = inlined_call_operand.vmem [shape: f32[1,4], index: 8, kind: input, shape index: {}]   ;;  %s5454_s9 = inlined_call_operand.vmem [shape: f32[1,4], index: 9, kind: input, shape index: {}]   ;;  %s5455_s10 = inlined_call_operand.vmem [shape: f32[1,4], index: 10, kind: input, shape index: {}]   ;;  %s5456_s11 = inlined_call_operand.hbm [shape: f32[2,4], index: 11, kind: output, shape index: {}]  }
   0x1   :  { %v43_v0 = vld [vmem:[%s5448_s3] sm:$0xff]  ;;  %v44_v1 = vld [vmem:[%s5448_s3 + $0x8] sm:$0xff]  ;;  %v45_v2 = vld [vmem:[%s5448_s3 + $0x10] sm:$0xff] }
   0x2   :  { %v4048_v3 = vpack.c.bf16 %v44_v1, %v43_v0  ;;  %v46_v4 = vld [vmem:[%s5448_s3 + $0x18] sm:$0xff]  ;;  %v39_v5 = vld [vmem:[%s5445_s0] sm:$0xff] }
   0x3   :  { %v4052_v6 = vpack.c.bf16 %v46_v4, %v45_v2  ;;  %3956 = vmatprep.mubr.msk.f32.mxu0 %vm50_vm0, %v39_v5 }
   0x4   :  { %16 = vsyncpa [#allocation3], 0  ;;  %4049 = vmatprep.subr.bf16.mxu0 %v4048_v3  ;;  %v40_v7 = vld [vmem:[%s5445_s0 + $0x8] sm:$0xff]  ;;  %s4236_s3 = smov 112   ;;  %s4237_s29 = smov 120   ;;  %v181_v12 = vlaneseq  ;;  %vm464_vm1 = vcmask 64512  }
   0x5   :  { %4051 = vmatpush3.bf16.msra.mxu0 %v4048_v3  ;;  %s4238_s30 = smov 96   ;;  %s4239_s12 = smov 104   ;;  %v4243_v10 = vmov 1983009808   ;;  %v4244_v13 = vmov 1934713408  }
   0x6   :  { %4053 = vmatprep.subr.bf16.mxu0 %v4052_v6  ;;  %s4240_s13 = smov 88   ;;  %s4241_s0 = smov 80   ;;  %v179_v11 = vunpack.c.l.s4 %v4243_v10  ;;  %v243_v14 = vunpack.c.l.s4 %v4244_v13  ;;  %v4347_v16 = vshrl.u32 %v181_v12, 7  ;;  %vm659_vm2 = vcmask 1041409  }
   0x7   :  { %s4242_s14 = smov 72   ;;  %vm661_vm3 = vcmask 1042434   ;;  %vm663_vm4 = vcmask 1043459   ;;  %vm665_vm5 = vcmask 1044484   ;;  %vm667_vm6 = vcmask 1045509   ;;  %s4247_s21 = smov 8  }
   0x8   :  { %v180_v15 = vunpack.c.0.s8 %v179_v11  ;;  %v244_v19 = vunpack.c.0.s8 %v243_v14  ;;  %vm669_vm7 = vcmask 1046534   ;;  %vm5457_vm8 = vcmask 1047559   ;;  %s4248_s22 = smov 24   ;;  %s4249_s23 = smov 32  }
   0x9   :  { %4055 = vmatpush3.bf16.msra.mxu0 %v4052_v6  ;;  %vm1106_vm10 = vcmask 130048   ;;  %s4250_s24 = smov 40  }
   0xa   :  { %v4350_v20 = vsub.s32 %v180_v15, %v4347_v16  ;;  %v4355_v27 = vsub.s32 %v244_v19, %v4347_v16 }
   0xc   :  { %3957 = vmatmul.mubr.msk.f32.vlgmr.msra.gmra.mrb[0].mxu0 %vm50_vm0, %v40_v7 }
  0xdf   :  { %v3958_v8 = vpop.f32.mrb[0].mxu0 }
  0xe0   :  { %142 = vrot.lane.b32.xlu0 %v3958_v8, %s4236_s3  ;;  %136 = vrot.lane.b32.xlu1 %v3958_v8, %s4237_s29  ;;  %v4337_v9 = vpop.f32.mrb[1].mxu0 }
  0xe4   :  { %154 = vrot.lane.b32.xlu0 %v3958_v8, %s4238_s30  ;;  %148 = vrot.lane.b32.xlu1 %v3958_v8, %s4239_s12 }
  0xe8   :  { %160 = vrot.lane.b32.xlu1 %v3958_v8, %s4240_s13  ;;  %134 = vrot.lane.b32.xlu0 %v4337_v9, %s4237_s29 }
  0xec   :  { %146 = vrot.lane.b32.xlu1 %v4337_v9, %s4239_s12  ;;  %140 = vrot.lane.b32.xlu0 %v4337_v9, %s4236_s3 }
  0xf0   :  { %152 = vrot.lane.b32.xlu1 %v4337_v9, %s4238_s30  ;;  %158 = vrot.lane.b32.xlu0 %v4337_v9, %s4240_s13  ;;  %s4251_s30 = smov 48  }
  0xf4   :  { %164 = vrot.lane.b32.xlu1 %v4337_v9, %s4241_s0  ;;  %170 = vrot.lane.b32.xlu0 %v4337_v9, %s4242_s14 }
  0xf8   :  { %172 = vrot.lane.b32.xlu1 %v3958_v8, %s4242_s14  ;;  %166 = vrot.lane.b32.xlu0 %v3958_v8, %s4241_s0 }
 0x152   :  { %v143_v17 = vpop.permute.xlu0 %142  ;;  %v137_v18 = vpop.permute.xlu1 %136 }
 0x153   :  { %v312_v21 = vcombine.low %v3958_v8, %v143_v17  ;;  %v313_v22 = vcombine.high %v3958_v8, %v143_v17 }
 0x155   :  { %v320_v28 = vrot.slane %v312_v21, %v4350_v20  ;;  %v327_v29 = vrot.slane %v313_v22, %v4350_v20 }
 0x156   :  { %v4352_v23 = vpop.permute.xlu0 %154  ;;  %v149_v24 = vpop.permute.xlu1 %148 }
 0x157   :  { %v328_v25 = vcombine.low %v137_v18, %v149_v24  ;;  %v329_v26 = vcombine.high %v137_v18, %v149_v24 }
 0x159   :  { %v336_v30 = vrot.slane %v328_v25, %v4350_v20  ;;  %v343_v31 = vrot.slane %v329_v26, %v4350_v20 }
 0x15a   :  { %v4361_v32 = vpop.permute.xlu1 %160  ;;  %v135_v33 = vpop.permute.xlu0 %134 }
 0x15b   :  { %v376_v34 = vcombine.low %v320_v28, %v336_v30  ;;  %v377_v35 = vcombine.high %v320_v28, %v336_v30  ;;  %v392_v36 = vcombine.low %v327_v29, %v343_v31  ;;  %v393_v37 = vcombine.high %v327_v29, %v343_v31 }
 0x15d   :  { %v4364_v38 = vrot.slane %v376_v34, %v4355_v27  ;;  %v4367_v39 = vrot.slane %v377_v35, %v4355_v27  ;;  %v4370_v40 = vrot.slane %v392_v36, %v4355_v27  ;;  %v4373_v41 = vrot.slane %v393_v37, %v4355_v27 }
 0x15e   :  { %v147_v42 = vpop.permute.xlu1 %146  ;;  %v141_v43 = vpop.permute.xlu0 %140 }
 0x15f   :  { %v192_v44 = vcombine.low %v135_v33, %v147_v42  ;;  %v193_v45 = vcombine.high %v135_v33, %v147_v42  ;;  %v176_v46 = vcombine.low %v4337_v9, %v141_v43  ;;  %v177_v47 = vcombine.high %v4337_v9, %v141_v43 }
 0x160   :  { %v3840_v48 = vcombine.low %v4364_v38, %v4367_v39  ;;  %v3842_v49 = vcombine.high %v4364_v38, %v4367_v39  ;;  %v3844_v50 = vcombine.low %v4370_v40, %v4373_v41  ;;  %v3846_v51 = vcombine.high %v4370_v40, %v4373_v41 }
 0x161   :  { %v200_v52 = vrot.slane %v192_v44, %v4350_v20  ;;  %v207_v53 = vrot.slane %v193_v45, %v4350_v20  ;;  %v184_v54 = vrot.slane %v176_v46, %v4350_v20  ;;  %v191_v55 = vrot.slane %v177_v47, %v4350_v20 }
 0x162   :  { %v153_v56 = vpop.permute.xlu1 %152  ;;  %v159_v57 = vpop.permute.xlu0 %158  ;;  %v4390_v58 = vrot.slane %v3840_v48, %v4350_v20  ;;  %v4393_v59 = vrot.slane %v3842_v49, %v4350_v20  ;;  %v4396_v60 = vrot.slane %v3844_v50, %v4350_v20  ;;  %v4399_v61 = vrot.slane %v3846_v51, %v4350_v20 }
 0x163   :  { %v240_v62 = vcombine.low %v184_v54, %v200_v52  ;;  %v241_v63 = vcombine.high %v184_v54, %v200_v52  ;;  %v256_v0 = vcombine.low %v191_v55, %v207_v53  ;;  %v257_v1 = vcombine.high %v191_v55, %v207_v53 }
 0x164   :  { %v1483_v2 = vcombine.low %v4390_v58, %v4393_v59  ;;  %v1515_v3 = vcombine.low %v4396_v60, %v4399_v61  ;;  %v1484_v4 = vcombine.high %v4390_v58, %v4393_v59  ;;  %v1516_v5 = vcombine.high %v4396_v60, %v4399_v61 }
 0x165   :  { %v4410_v6 = vrot.slane %v240_v62, %v4355_v27  ;;  %v4413_v7 = vrot.slane %v241_v63, %v4355_v27  ;;  %v4416_v8 = vrot.slane %v256_v0, %v4355_v27  ;;  %v4419_v9 = vrot.slane %v257_v1, %v4355_v27 }
 0x166   :  { %v165_v10 = vpop.permute.xlu1 %164  ;;  %v171_v11 = vpop.permute.xlu0 %170  ;;  %v1491_v13 = vrot.slane %v1483_v2, %v4355_v27  ;;  %v1523_v14 = vrot.slane %v1515_v3, %v4355_v27 }
 0x167   :  { %v208_v15 = vcombine.low %v153_v56, %v165_v10  ;;  %v209_v17 = vcombine.high %v153_v56, %v165_v10  ;;  %v224_v18 = vcombine.low %v159_v57, %v171_v11  ;;  %v225_v19 = vcombine.high %v159_v57, %v171_v11 }
 0x168   :  { %v3832_v21 = vcombine.low %v4410_v6, %v4413_v7  ;;  %v3834_v22 = vcombine.high %v4410_v6, %v4413_v7  ;;  %v3836_v24 = vcombine.low %v4416_v8, %v4419_v9  ;;  %v3838_v25 = vcombine.high %v4416_v8, %v4419_v9 }
 0x169   :  { %v216_v26 = vrot.slane %v208_v15, %v4350_v20  ;;  %v223_v28 = vrot.slane %v209_v17, %v4350_v20  ;;  %v232_v29 = vrot.slane %v224_v18, %v4350_v20  ;;  %v239_v30 = vrot.slane %v225_v19, %v4350_v20 }
 0x16a   :  { %v173_v31 = vpop.permute.xlu1 %172  ;;  %v167_v33 = vpop.permute.xlu0 %166  ;;  %v4436_v34 = vrot.slane %v3832_v21, %v4350_v20  ;;  %v4439_v35 = vrot.slane %v3834_v22, %v4350_v20  ;;  %v4442_v36 = vrot.slane %v3836_v24, %v4350_v20  ;;  %v4445_v37 = vrot.slane %v3838_v25, %v4350_v20 }
 0x16b   :  { %v272_v42 = vcombine.low %v216_v26, %v232_v29  ;;  %v273_v43 = vcombine.high %v216_v26, %v232_v29  ;;  %v288_v44 = vcombine.low %v223_v28, %v239_v30  ;;  %v289_v45 = vcombine.high %v223_v28, %v239_v30 }
 0x16c   :  { %v360_v46 = vcombine.low %v4361_v32, %v173_v31  ;;  %v361_v47 = vcombine.high %v4361_v32, %v173_v31  ;;  %v344_v48 = vcombine.low %v4352_v23, %v167_v33  ;;  %v345_v49 = vcombine.high %v4352_v23, %v167_v33  ;;  %v4500_v33 = vld [vmem:[%s5450_s5] sm:$0xff]  ;;  %s4252_s5 = smov 56  }
 0x16d   :  { %v4452_v50 = vrot.slane %v272_v42, %v4355_v27  ;;  %v4455_v51 = vrot.slane %v273_v43, %v4355_v27  ;;  %v4458_v52 = vrot.slane %v288_v44, %v4355_v27  ;;  %v4465_v56 = vrot.slane %v289_v45, %v4355_v27 }
 0x16e   :  { %v368_v53 = vrot.slane %v360_v46, %v4350_v20  ;;  %v375_v54 = vrot.slane %v361_v47, %v4350_v20  ;;  %v352_v55 = vrot.slane %v344_v48, %v4350_v20  ;;  %v359_v32 = vrot.slane %v345_v49, %v4350_v20 }
 0x16f   :  { %v1347_v23 = vcombine.low %v4436_v34, %v4439_v35  ;;  %v1379_v57 = vcombine.low %v4442_v36, %v4445_v37  ;;  %v1547_v62 = vcombine.low %v1491_v13, %v1523_v14  ;;  %v1548_v2 = vcombine.high %v1491_v13, %v1523_v14 }
 0x170   :  { %v408_v63 = vcombine.low %v352_v55, %v368_v53  ;;  %v409_v0 = vcombine.high %v352_v55, %v368_v53  ;;  %v425_v1 = vcombine.high %v359_v32, %v375_v54  ;;  %v3833_v11 = vcombine.low %v4452_v50, %v4455_v51 }
 0x171   :  { %v1355_v3 = vrot.slane %v1347_v23, %v4355_v27  ;;  %v1387_v10 = vrot.slane %v1379_v57, %v4355_v27  ;;  %v3835_v15 = vcombine.high %v4452_v50, %v4455_v51  ;;  %v424_v19 = vcombine.low %v359_v32, %v375_v54 }
 0x172   :  { %v416_v17 = vrot.slane %v408_v63, %v4355_v27  ;;  %v423_v18 = vrot.slane %v409_v0, %v4355_v27  ;;  %v4480_v21 = vrot.slane %v425_v1, %v4355_v27  ;;  %v1298_v14 = vrot.slane %v3833_v11, %v4350_v20 }
 0x173   :  { %v1411_v22 = vcombine.low %v1355_v3, %v1387_v10  ;;  %v1412_v13 = vcombine.high %v1355_v3, %v1387_v10  ;;  %v1314_v24 = vrot.slane %v3835_v15, %v4350_v20  ;;  %v3837_v42 = vcombine.low %v4458_v52, %v4465_v56 }
 0x174   :  { %v4485_v25 = vcombine.high %v4364_v38, %v416_v17  ;;  %v440_v26 = vcombine.low %v4364_v38, %v416_v17  ;;  %v4489_v28 = vcombine.low %v4367_v39, %v423_v18  ;;  %v4493_v29 = vcombine.low %v4373_v41, %v4480_v21 }
 0x175   :  { %v4056_v30 = vpack.c.bf16 %v1547_v62, %v1411_v22  ;;  %v4495_v31 = vpack.c.bf16 %v1548_v2, %v1412_v13  ;;  %v3839_v38 = vcombine.high %v4458_v52, %v4465_v56  ;;  %v432_v43 = vrot.slane %v424_v19, %v4355_v27 }
 0x176   :  { %v522_v44 = vmul.f32 %v4485_v25, %v4500_v33  ;;  %v521_v45 = vmul.f32 %v440_v26, %v4500_v33  ;;  %v523_v46 = vmul.f32 %v4489_v28, %v4500_v33  ;;  %v527_v47 = vmul.f32 %v4493_v29, %v4500_v33 }
 0x177   :  { %4057 = vmatprep.subr.bf16.mxu1 %v4056_v30  ;;  %v1330_v48 = vrot.slane %v3837_v42, %v4350_v20  ;;  %v1346_v49 = vrot.slane %v3839_v38, %v4350_v20  ;;  %v3841_v53 = vcombine.low %v416_v17, %v423_v18  ;;  %v1363_v32 = vcombine.low %v1298_v14, %v1314_v24 }
 0x178   :  { %4059 = vmatpush3.bf16.msra.mxu1 %v4056_v30  ;;  %v556_v54 = vsel %vm464_vm1, %v522_v44, 0.0  ;;  %v553_v55 = vsel %vm464_vm1, %v521_v45, 0.0  ;;  %v3843_v62 = vcombine.high %v416_v17, %v423_v18  ;;  %v3845_v63 = vcombine.low %v432_v43, %v4480_v21 }
 0x179   :  { %4061 = vmatprep.subr.bf16.mxu1 %v4495_v31  ;;  %557 = vadd.xlane.f32.xlu0 %v556_v54  ;;  %v1395_v23 = vcombine.low %v1330_v48, %v1346_v49  ;;  %v1434_v57 = vrot.slane %v3841_v53, %v4350_v20  ;;  %v3847_v0 = vcombine.high %v432_v43, %v4480_v21  ;;  %v559_v2 = vsel %vm464_vm1, %v523_v46, 0.0 }
 0x17a   :  { %554 = vadd.xlane.f32.xlu1 %v553_v55  ;;  %v4523_v1 = vcombine.high %v4367_v39, %v423_v18  ;;  %v571_v3 = vsel %vm464_vm1, %v527_v47, 0.0  ;;  %v1364_v10 = vcombine.high %v1298_v14, %v1314_v24  ;;  %v1396_v11 = vcombine.high %v1330_v48, %v1346_v49  ;;  %v4535_v39 = vld [vmem:[%s5449_s4] sm:$0xff] }
 0x17b   :  { %v1450_v15 = vrot.slane %v3843_v62, %v4350_v20  ;;  %v1466_v19 = vrot.slane %v3845_v63, %v4350_v20  ;;  %v1482_v22 = vrot.slane %v3847_v0, %v4350_v20  ;;  %v4538_v18 = vrot.slane %v1363_v32, %v4355_v27 }
 0x17c   :  { %v524_v17 = vmul.f32 %v4523_v1, %v4500_v33  ;;  %v4541_v13 = vrot.slane %v1395_v23, %v4355_v27  ;;  %v456_v14 = vmul.f32 %v440_v26, %v4535_v39  ;;  %v4545_v24 = vrot.slane %v1364_v10, %v4355_v27 }
 0x17d   :  { %560 = vadd.xlane.f32.xlu0 %v559_v2  ;;  %v1499_v30 = vcombine.low %v1434_v57, %v1450_v15  ;;  %v1531_v42 = vcombine.low %v1466_v19, %v1482_v22  ;;  %v4548_v38 = vrot.slane %v1396_v11, %v4355_v27  ;;  %v1500_v44 = vcombine.high %v1434_v57, %v1450_v15 }
 0x17e   :  { %572 = vadd.xlane.f32.xlu1 %v571_v3  ;;  %v562_v45 = vsel %vm464_vm1, %v524_v17, 0.0  ;;  %v1532_v46 = vcombine.high %v1466_v19, %v1482_v22  ;;  %v4552_v47 = vcombine.low %v4370_v40, %v432_v43  ;;  %v4556_v48 = vcombine.high %v4410_v6, %v4452_v50 }
 0x17f   :  { %v4559_v26 = vrot.slane %v1499_v30, %v4355_v27  ;;  %v4562_v49 = vrot.slane %v1531_v42, %v4355_v27  ;;  %v4565_v53 = vrot.slane %v1500_v44, %v4355_v27  ;;  %v4568_v54 = vcombine.high %v4370_v40, %v432_v43 }
 0x180   :  { %v489_v55 = vsel %vm464_vm1, %v456_v14, 0.0  ;;  %v4572_v32 = vrot.slane %v1532_v46, %v4355_v27  ;;  %v525_v23 = vmul.f32 %v4552_v47, %v4500_v33  ;;  %v514_v57 = vmul.f32 %v4556_v48, %v4500_v33 }
 0x181   :  { %563 = vadd.xlane.f32.xlu0 %v562_v45  ;;  %v1415_v62 = vcombine.low %v4538_v18, %v4541_v13  ;;  %v1551_v63 = vcombine.low %v4559_v26, %v4562_v49  ;;  %v1417_v40 = vcombine.low %v4545_v24, %v4548_v38  ;;  %v526_v3 = vmul.f32 %v4568_v54, %v4500_v33 }
 0x182   :  { %490 = vadd.xlane.f32.xlu1 %v489_v55  ;;  %v1553_v43 = vcombine.low %v4565_v53, %v4572_v32  ;;  %v565_v2 = vsel %vm464_vm1, %v525_v23, 0.0  ;;  %v4591_v10 = vcombine.high %v4373_v41, %v4480_v21  ;;  %v532_v11 = vsel %vm464_vm1, %v514_v57, 0.0 }
 0x183   :  { %v4072_v0 = vpack.c.bf16 %v1551_v63, %v1415_v62  ;;  %v462_v15 = vmul.f32 %v4493_v29, %v4535_v39  ;;  %v4598_v19 = vcombine.low %v4416_v8, %v4458_v52  ;;  %v568_v41 = vsel %vm464_vm1, %v526_v3, 0.0 }
 0x184   :  { %v4600_v22 = vpack.c.bf16 %v1553_v43, %v1417_v40  ;;  %v528_v21 = vmul.f32 %v4591_v10, %v4500_v33  ;;  %v304_v17 = vcombine.low %v4410_v6, %v4452_v50  ;;  %v4613_v30 = vcombine.high %v4416_v8, %v4458_v52 }
 0x185   :  { %566 = vadd.xlane.f32.xlu0 %v565_v2  ;;  %4073 = vmatprep.subr.bf16.mxu0 %v4072_v0  ;;  %v507_v29 = vsel %vm464_vm1, %v462_v15, 0.0  ;;  %v517_v14 = vmul.f32 %v4598_v19, %v4500_v33  ;;  %v306_v45 = vcombine.low %v4413_v7, %v4455_v51  ;;  %v310_v46 = vcombine.low %v4419_v9, %v4465_v56 }
 0x186   :  { %533 = vadd.xlane.f32.xlu1 %v532_v11  ;;  %4075 = vmatpush3.bf16.msra.mxu0 %v4072_v0  ;;  %v574_v42 = vsel %vm464_vm1, %v528_v21, 0.0  ;;  %v513_v44 = vmul.f32 %v304_v17, %v4500_v33  ;;  %v518_v50 = vmul.f32 %v4613_v30, %v4500_v33  ;;  %v4626_v8 = vcombine.high %v4413_v7, %v4455_v51 }
 0x187   :  { %4081 = vmatprep.subr.bf16.mxu0 %v4600_v22  ;;  %v541_v6 = vsel %vm464_vm1, %v517_v14, 0.0  ;;  %v1498_v52 = vrot.slane %v1484_v4, %v4355_v27  ;;  %v1530_v55 = vrot.slane %v1516_v5, %v4355_v27  ;;  %v515_v57 = vmul.f32 %v306_v45, %v4500_v33 }
 0x188   :  { %v529_v23 = vsel %vm464_vm1, %v513_v44, 0.0  ;;  %v544_v62 = vsel %vm464_vm1, %v518_v50, 0.0  ;;  %v519_v7 = vmul.f32 %v310_v46, %v4500_v33  ;;  %v311_v51 = vcombine.high %v4419_v9, %v4465_v56 }
 0x189   :  { %569 = vadd.xlane.f32.xlu0 %v568_v41  ;;  %v516_v58 = vmul.f32 %v4626_v8, %v4500_v33  ;;  %v1348_v59 = vcombine.high %v4436_v34, %v4439_v35  ;;  %v1380_v60 = vcombine.high %v4442_v36, %v4445_v37  ;;  %v1549_v61 = vcombine.low %v1498_v52, %v1530_v55 }
 0x18a   :  { %508 = vadd.xlane.f32.xlu1 %v507_v29  ;;  %v1550_v4 = vcombine.high %v1498_v52, %v1530_v55  ;;  %v1416_v5 = vcombine.high %v4538_v18, %v4541_v13  ;;  %v1552_v63 = vcombine.high %v4559_v26, %v4562_v49  ;;  %v1418_v9 = vcombine.high %v4545_v24, %v4548_v38 }
 0x18b   :  { %v535_v56 = vsel %vm464_vm1, %v515_v57, 0.0  ;;  %v1362_v40 = vrot.slane %v1348_v59, %v4355_v27  ;;  %v1394_v34 = vrot.slane %v1380_v60, %v4355_v27  ;;  %v1554_v35 = vcombine.high %v4565_v53, %v4572_v32 }
 0x18c   :  { %v547_v36 = vsel %vm464_vm1, %v519_v7, 0.0  ;;  %v520_v37 = vmul.f32 %v311_v51, %v4500_v33  ;;  %v4661_v18 = vpack.c.bf16 %v1552_v63, %v1416_v5  ;;  %v538_v38 = vsel %vm464_vm1, %v516_v58, 0.0 }
 0x18d   :  { %575 = vadd.xlane.f32.xlu0 %v574_v42  ;;  %v1413_v13 = vcombine.low %v1362_v40, %v1394_v34  ;;  %v1414_v26 = vcombine.high %v1362_v40, %v1394_v34  ;;  %v4663_v24 = vpack.c.bf16 %v1554_v35, %v1418_v9  ;;  %v457_v49 = vmul.f32 %v4485_v25, %v4535_v39 }
 0x18e   :  { %542 = vadd.xlane.f32.xlu1 %v541_v6  ;;  %v550_v32 = vsel %vm464_vm1, %v520_v37, 0.0  ;;  %v448_v33 = vmul.f32 %v304_v17, %v4535_v39  ;;  %v458_v2 = vmul.f32 %v4489_v28, %v4535_v39  ;;  %v450_v25 = vmul.f32 %v306_v45, %v4535_v39 }
 0x18f   :  { %v4668_v43 = vpack.c.bf16 %v1549_v61, %v1413_v13  ;;  %v4670_v53 = vpack.c.bf16 %v1550_v4, %v1414_v26  ;;  %v492_v0 = vsel %vm464_vm1, %v457_v49, 0.0  ;;  %v459_v15 = vmul.f32 %v4523_v1, %v4535_v39 }
 0x190   :  { %v465_v3 = vsel %vm464_vm1, %v448_v33, 0.0  ;;  %v495_v11 = vsel %vm464_vm1, %v458_v2, 0.0  ;;  %v471_v41 = vsel %vm464_vm1, %v450_v25, 0.0  ;;  %v452_v21 = vmul.f32 %v4598_v19, %v4535_v39 }
 0x191   :  { %530 = vadd.xlane.f32.xlu0 %v529_v23  ;;  %v498_v28 = vsel %vm464_vm1, %v459_v15, 0.0  ;;  %v460_v17 = vmul.f32 %v4552_v47, %v4535_v39  ;;  %v453_v14 = vmul.f32 %v4613_v30, %v4535_v39  ;;  %v461_v42 = vmul.f32 %v4568_v54, %v4535_v39 }
 0x192   :  { %545 = vadd.xlane.f32.xlu1 %v544_v62  ;;  %v477_v29 = vsel %vm464_vm1, %v452_v21, 0.0  ;;  %v454_v44 = vmul.f32 %v310_v46, %v4535_v39  ;;  %v463_v45 = vmul.f32 %v4591_v10, %v4535_v39  ;;  %v455_v6 = vmul.f32 %v311_v51, %v4535_v39 }
 0x193   :  { %v501_v1 = vsel %vm464_vm1, %v460_v17, 0.0  ;;  %v480_v19 = vsel %vm464_vm1, %v453_v14, 0.0  ;;  %v504_v47 = vsel %vm464_vm1, %v461_v42, 0.0  ;;  %v449_v54 = vmul.f32 %v4556_v48, %v4535_v39 }
 0x194   :  { %v483_v30 = vsel %vm464_vm1, %v454_v44, 0.0  ;;  %v510_v50 = vsel %vm464_vm1, %v463_v45, 0.0  ;;  %v486_v46 = vsel %vm464_vm1, %v455_v6, 0.0  ;;  %v451_v10 = vmul.f32 %v4626_v8, %v4535_v39 }
 0x195   :  { %536 = vadd.xlane.f32.xlu0 %v535_v56  ;;  %v468_v52 = vsel %vm464_vm1, %v449_v54, 0.0  ;;  %v594_v39 = vand.u32 127, %v181_v12 }
 0x196   :  { %548 = vadd.xlane.f32.xlu1 %v547_v36  ;;  %v474_v55 = vsel %vm464_vm1, %v451_v10, 0.0 }
 0x197   :  { %v4715_v9 = vsub.s32 %v594_v39, %v4347_v16 }
 0x199   :  { %539 = vadd.xlane.f32.xlu0 %v538_v38 }
 0x19a   :  { %551 = vadd.xlane.f32.xlu1 %v550_v32 }
 0x19d   :  { %493 = vadd.xlane.f32.xlu0 %v492_v0 }
 0x19e   :  { %466 = vadd.xlane.f32.xlu1 %v465_v3 }
 0x1a1   :  { %496 = vadd.xlane.f32.xlu0 %v495_v11 }
 0x1a2   :  { %472 = vadd.xlane.f32.xlu1 %v471_v41 }
 0x1a5   :  { %499 = vadd.xlane.f32.xlu0 %v498_v28 }
 0x1a6   :  { %478 = vadd.xlane.f32.xlu1 %v477_v29 }
 0x1a9   :  { %502 = vadd.xlane.f32.xlu0 %v501_v1 }
 0x1aa   :  { %481 = vadd.xlane.f32.xlu1 %v480_v19 }
 0x1ad   :  { %505 = vadd.xlane.f32.xlu0 %v504_v47 }
 0x1ae   :  { %484 = vadd.xlane.f32.xlu1 %v483_v30 }
 0x1b1   :  { %511 = vadd.xlane.f32.xlu0 %v510_v50 }
 0x1b2   :  { %487 = vadd.xlane.f32.xlu1 %v486_v46 }
 0x1b5   :  { %469 = vadd.xlane.f32.xlu0 %v468_v52 }
 0x1b9   :  { %475 = vadd.xlane.f32.xlu0 %v474_v55 }
 0x206   :  { %v558_v23 = vpop.xlane.xlu0 %557 }
 0x207   :  { %v555_v57 = vpop.xlane.xlu1 %554  ;;  %v634_v36 = vrot.slane %v558_v23, %v4715_v9 }
 0x208   :  { %v630_v37 = vrot.slane %v555_v57, %v4715_v9  ;;  %v771_v57 = vsub.s32 5, %v4347_v16 }
 0x20a   :  { %v561_v62 = vpop.xlane.xlu0 %560  ;;  %v673_v25 = vsel %vm659_vm2, %v634_v36, %v630_v37 }
 0x20b   :  { %v573_v7 = vpop.xlane.xlu1 %572  ;;  %v638_v12 = vrot.slane %v561_v62, %v4715_v9  ;;  %v4753_v62 = vsub.s32 0, %v4347_v16 }
 0x20c   :  { %v654_v30 = vrot.slane %v573_v7, %v4715_v9 }
 0x20d   :  { %v674_v21 = vsel %vm661_vm3, %v638_v12, %v673_v25  ;;  %v760_v12 = vsub.s32 4, %v4347_v16 }
 0x20e   :  { %v564_v51 = vpop.xlane.xlu0 %563 }
 0x20f   :  { %v4709_v58 = vpop.xlane.xlu1 %490  ;;  %v642_v38 = vrot.slane %v564_v51, %v4715_v9 }
 0x211   :  { %v675_v29 = vsel %vm663_vm4, %v642_v38, %v674_v21 }
 0x212   :  { %v567_v48 = vpop.xlane.xlu0 %566 }
 0x213   :  { %v534_v59 = vpop.xlane.xlu1 %533  ;;  %v646_v33 = vrot.slane %v567_v48, %v4715_v9 }
 0x214   :  { %v602_v13 = vrot.slane %v534_v59, %v4715_v9  ;;  %v782_v59 = vsub.s32 6, %v4347_v16 }
 0x215   :  { %v676_v42 = vsel %vm665_vm5, %v646_v33, %v675_v29 }
 0x216   :  { %v570_v60 = vpop.xlane.xlu0 %569 }
 0x217   :  { %v4711_v61 = vpop.xlane.xlu1 %508  ;;  %v650_v11 = vrot.slane %v570_v60, %v4715_v9 }
 0x219   :  { %v677_v45 = vsel %vm667_vm6, %v650_v11, %v676_v42 }
 0x21a   :  { %v576_v4 = vpop.xlane.xlu0 %575  ;;  %v678_v6 = vsel %vm669_vm7, %v654_v30, %v677_v45 }
 0x21b   :  { %v543_v5 = vpop.xlane.xlu1 %542  ;;  %v658_v44 = vrot.slane %v576_v4, %v4715_v9  ;;  %v793_v4 = vsub.s32 7, %v4347_v16 }
 0x21c   :  { %v614_v0 = vrot.slane %v543_v5, %v4715_v9  ;;  %v727_v5 = vsub.s32 1, %v4347_v16 }
 0x21d   :  { %v679_v50 = vsel %vm5457_vm8, %v658_v44, %v678_v6 }
 0x21e   :  { %v531_v8 = vpop.xlane.xlu0 %530 }
 0x21f   :  { %v546_v63 = vpop.xlane.xlu1 %545  ;;  %v598_v40 = vrot.slane %v531_v8, %v4715_v9 }
 0x220   :  { %v618_v15 = vrot.slane %v546_v63, %v4715_v9 }
 0x221   :  { %v660_v49 = vsel %vm659_vm2, %v602_v13, %v598_v40 }
 0x222   :  { %v537_v56 = vpop.xlane.xlu0 %536 }
 0x223   :  { %v549_v34 = vpop.xlane.xlu1 %548  ;;  %v606_v35 = vrot.slane %v537_v56, %v4715_v9  ;;  %v738_v56 = vsub.s32 2, %v4347_v16 }
 0x224   :  { %v622_v28 = vrot.slane %v549_v34, %v4715_v9 }
 0x225   :  { %v662_v2 = vsel %vm661_vm3, %v606_v35, %v660_v49  ;;  %v749_v35 = vsub.s32 3, %v4347_v16 }
 0x226   :  { %v540_v26 = vpop.xlane.xlu0 %539 }
 0x227   :  { %v610_v32 = vrot.slane %v540_v26, %v4715_v9  ;;  %v552_v3 = vpop.xlane.xlu1 %551 }
 0x228   :  { %v626_v14 = vrot.slane %v552_v3, %v4715_v9 }
 0x229   :  { %v664_v41 = vsel %vm663_vm4, %v610_v32, %v662_v2 }
 0x22a   :  { %v666_v17 = vsel %vm665_vm5, %v614_v0, %v664_v41  ;;  %v494_v63 = vpop.xlane.xlu0 %493 }
 0x22b   :  { %v668_v1 = vsel %vm667_vm6, %v618_v15, %v666_v17  ;;  %v467_v54 = vpop.xlane.xlu1 %466  ;;  %v857_v17 = vrot.slane %v494_v63, %v4715_v9 }
 0x22c   :  { %v670_v19 = vsel %vm669_vm7, %v622_v28, %v668_v1  ;;  %v821_v2 = vrot.slane %v467_v54, %v4715_v9  ;;  %v853_v1 = vrot.slane %v4709_v58, %v4715_v9 }
 0x22d   :  { %v672_v47 = vsel %vm5457_vm8, %v626_v14, %v670_v19 }
 0x22e   :  { %682 = vxpose.xlu1.b32.start [1/2] (short) (narrow) %v672_v47, 8  ;;  %v497_v40 = vpop.xlane.xlu0 %496  ;;  %v889_v45 = vsel %vm659_vm2, %v857_v17, %v853_v1 }
 0x22f   :  { %v473_v46 = vpop.xlane.xlu1 %472  ;;  %v861_v14 = vrot.slane %v497_v40, %v4715_v9 }
 0x230   :  { %v829_v11 = vrot.slane %v473_v46, %v4715_v9 }
 0x231   :  { %v890_v6 = vsel %vm661_vm3, %v861_v14, %v889_v45 }
 0x232   :  { %683 = vxpose.xlu1.b32.end [2/2] (short) (narrow) %v679_v50, 8  ;;  %v500_v36 = vpop.xlane.xlu0 %499 }
 0x233   :  { %v479_v52 = vpop.xlane.xlu1 %478  ;;  %v865_v42 = vrot.slane %v500_v36, %v4715_v9 }
 0x234   :  { %v837_v21 = vrot.slane %v479_v52, %v4715_v9 }
 0x235   :  { %v891_v54 = vsel %vm663_vm4, %v865_v42, %v890_v6 }
 0x236   :  { %v503_v13 = vpop.xlane.xlu0 %502 }
 0x237   :  { %v482_v10 = vpop.xlane.xlu1 %481  ;;  %v869_v44 = vrot.slane %v503_v13, %v4715_v9 }
 0x238   :  { %v841_v29 = vrot.slane %v482_v10, %v4715_v9 }
 0x239   :  { %v892_v46 = vsel %vm665_vm5, %v869_v44, %v891_v54 }
 0x23a   :  { %v506_v38 = vpop.xlane.xlu0 %505 }
 0x23b   :  { %v4747_v55 = vpop.xlane.xlu1 %484  ;;  %v873_v30 = vrot.slane %v506_v38, %v4715_v9 }
 0x23c   :  { %v845_v47 = vrot.slane %v4747_v55, %v4715_v9 }
 0x23d   :  { %v893_v55 = vsel %vm667_vm6, %v873_v30, %v892_v46 }
 0x23e   :  { %v512_v49 = vpop.xlane.xlu0 %511 }
 0x23f   :  { %v4749_v23 = vpop.xlane.xlu1 %487  ;;  %v881_v52 = vrot.slane %v512_v49, %v4715_v9  ;;  %v4815_v49 = vld [vmem:[%s5446_s1 + $0x8] sm:$0xff] }
 0x240   :  { %v849_v58 = vrot.slane %v4749_v23, %v4715_v9  ;;  %vm1085_vm9 = vcmp.gt.f32.partialorder %v4815_v49, 0.0 }
 0x242   :  { %v470_v32 = vpop.xlane.xlu0 %469 }
 0x243   :  { %v825_v33 = vrot.slane %v470_v32, %v4715_v9  ;;  %v4820_v32 = vld [vmem:[%s5446_s1] sm:$0xff]  ;;  %s4246_s1 = smov 16  }
 0x244   :  { %vm1084_vm11 = vcmp.gt.f32.partialorder %v4820_v32, 0.0 }
 0x245   :  { %v882_v3 = vsel %vm659_vm2, %v825_v33, %v821_v2 }
 0x246   :  { %v476_v0 = vpop.xlane.xlu0 %475  ;;  %v883_v15 = vsel %vm661_vm3, %v829_v11, %v882_v3 }
 0x247   :  { %v833_v25 = vrot.slane %v476_v0, %v4715_v9 }
 0x249   :  { %v884_v41 = vsel %vm663_vm4, %v833_v25, %v883_v15 }
 0x24a   :  { %v885_v28 = vsel %vm665_vm5, %v837_v21, %v884_v41 }
 0x24b   :  { %v886_v19 = vsel %vm667_vm6, %v841_v29, %v885_v28 }
 0x24c   :  { %v887_v50 = vsel %vm669_vm7, %v845_v47, %v886_v19 }
 0x24d   :  { %v888_v10 = vsel %vm5457_vm8, %v849_v58, %v887_v50 }
 0x2ae   :  { %v698_v7 = vpop.trf.xlu1 }
 0x2af   :  { %v772_v51 = vrot.slane %v698_v7, %v771_v57  ;;  %v717_v48 = vrot.slane %v698_v7, %v4753_v62  ;;  %v783_v60 = vrot.slane %v698_v7, %v782_v59  ;;  %v794_v39 = vrot.slane %v698_v7, %v793_v4 }
 0x2b0   :  { %v728_v8 = vrot.slane %v698_v7, %v727_v5  ;;  %v739_v34 = vrot.slane %v698_v7, %v738_v56  ;;  %v750_v37 = vrot.slane %v698_v7, %v749_v35  ;;  %v761_v26 = vrot.slane %v698_v7, %v760_v12 }
 0x2b1   :  { %774 = vbcast.lane.b32.xlu1 %v772_v51, 256  ;;  %719 = vbcast.lane.b32.xlu0 %v717_v48, 256  ;;  %v877_v57 = vrot.slane %v4711_v61, %v4715_v9  ;;  %v4245_v56 = vmov 1966171168  }
 0x2b2   :  { %v933_v61 = vunpack.c.l.s4 %v4245_v56 }
 0x2b3   :  { %v894_v7 = vsel %vm669_vm7, %v877_v57, %v893_v55 }
 0x2b4   :  { %v934_v40 = vunpack.c.0.s8 %v933_v61 }
 0x2b5   :  { %785 = vbcast.lane.b32.xlu1 %v783_v60, 256  ;;  %723 = vbcast.lane.b32.xlu0 %v717_v48, 264 }
 0x2b6   :  { %v4807_v35 = vsub.s32 %v934_v40, %v4347_v16 }
 0x2b9   :  { %796 = vbcast.lane.b32.xlu1 %v794_v39, 256  ;;  %730 = vbcast.lane.b32.xlu0 %v728_v8, 256 }
 0x2bd   :  { %789 = vbcast.lane.b32.xlu1 %v783_v60, 264  ;;  %734 = vbcast.lane.b32.xlu0 %v728_v8, 264 }
 0x2c1   :  { %800 = vbcast.lane.b32.xlu1 %v794_v39, 264  ;;  %741 = vbcast.lane.b32.xlu0 %v739_v34, 256 }
 0x2c5   :  { %745 = vbcast.lane.b32.xlu0 %v739_v34, 264 }
 0x2c9   :  { %752 = vbcast.lane.b32.xlu0 %v750_v37, 256 }
 0x2cd   :  { %756 = vbcast.lane.b32.xlu0 %v750_v37, 264 }
 0x2d1   :  { %763 = vbcast.lane.b32.xlu0 %v761_v26, 256 }
 0x2d5   :  { %767 = vbcast.lane.b32.xlu0 %v761_v26, 264 }
 0x2d9   :  { %778 = vbcast.lane.b32.xlu0 %v772_v51, 264  ;;  %v895_v51 = vsel %vm5457_vm8, %v881_v52, %v894_v7 }
 0x2f7   :  { %898 = vxpose.xlu0.b32.start [1/2] (short) (narrow) %v888_v10, 8 }
 0x2fb   :  { %899 = vxpose.xlu0.b32.end [2/2] (short) (narrow) %v895_v51, 8 }
 0x323   :  { %v720_v48 = vpop.permute.xlu0 %719  ;;  %v4822_v16 = vpop.permute.xlu1 %774 }
 0x327   :  { %v724_v59 = vpop.permute.xlu0 %723  ;;  %v786_v44 = vpop.permute.xlu1 %785 }
 0x32b   :  { %v731_v23 = vpop.permute.xlu0 %730  ;;  %v797_v56 = vpop.permute.xlu1 %796 }
 0x32f   :  { %v735_v60 = vpop.permute.xlu0 %734 }
 0x333   :  { %v742_v4 = vpop.permute.xlu0 %741 }
 0x337   :  { %v4796_v5 = vpop.permute.xlu0 %745 }
 0x33b   :  { %v753_v39 = vpop.permute.xlu0 %752 }
 0x33f   :  { %v4798_v8 = vpop.permute.xlu0 %756 }
 0x343   :  { %v4800_v63 = vpop.permute.xlu0 %763 }
 0x347   :  { %v4802_v9 = vpop.permute.xlu0 %767 }
 0x34b   :  { %v4804_v34 = vpop.permute.xlu0 %778 }
 0x377   :  { %v914_v36 = vpop.trf.xlu0 }
 0x378   :  { %v931_v37 = vcombine.high %v914_v36, %v914_v36  ;;  %v938_v13 = vrot.slane %v914_v36, %v4807_v35 }
 0x37a   :  { %v945_v12 = vrot.slane %v931_v37, %v4807_v35  ;;  %v946_v26 = vcombine.high %v938_v13, %v938_v13  ;;  %v954_v38 = vrot.slane %v938_v13, %v4807_v35 }
 0x37c   :  { %v4825_v33 = vrot.slane %v945_v12, %v4807_v35  ;;  %v968_v0 = vrot.slane %v946_v26, %v4807_v35  ;;  %v976_v2 = vcombine.high %v954_v38, %v954_v38  ;;  %v983_v3 = vrot.slane %v954_v38, %v4753_v62 }
 0x37d   :  { %v947_v15 = vcombine.high %v945_v12, %v945_v12 }
 0x37e   :  { %v978_v25 = vcombine.high %v968_v0, %v968_v0  ;;  %v987_v11 = vrot.slane %v968_v0, %v4753_v62  ;;  %v991_v41 = vrot.slane %v976_v2, %v4753_v62  ;;  %v1021_v21 = vadd.f32 %v983_v3, %v724_v59 }
 0x37f   :  { %v1020_v28 = vadd.f32 %v983_v3, %v720_v48  ;;  %v999_v17 = vrot.slane %v4825_v33, %v4753_v62  ;;  %v975_v51 = vrot.slane %v947_v15, %v4807_v35 }
 0x380   :  { %v1022_v29 = vadd.f32 %v987_v11, %v731_v23  ;;  %v1023_v14 = vadd.f32 %v987_v11, %v735_v60  ;;  %v995_v1 = vrot.slane %v978_v25, %v4753_v62  ;;  %vm1037_vm12 = vcmp.gt.f32.partialorder %v1021_v21, 0.0 }
 0x381   :  { %v1053_v42 = vmul.f32 0.2, %v1021_v21  ;;  %vm1036_vm13 = vcmp.gt.f32.partialorder %v1020_v28, 0.0  ;;  %v1052_v19 = vmul.f32 0.2, %v1020_v28  ;;  %v1024_v47 = vadd.f32 %v991_v41, %v742_v4 }
 0x382   :  { %vm1038_vm14 = vcmp.gt.f32.partialorder %v1022_v29, 0.0  ;;  %v1054_v45 = vmul.f32 0.2, %v1022_v29  ;;  %vm1039_vm15 = vcmp.gt.f32.partialorder %v1023_v14, 0.0  ;;  %v1055_v50 = vmul.f32 0.2, %v1023_v14 }
 0x383   :  { %v1069_v30 = vsel %vm1037_vm12, %v1021_v21, %v1053_v42  ;;  %v1068_v6 = vsel %vm1036_vm13, %v1020_v28, %v1052_v19  ;;  %v1026_v54 = vadd.f32 %v995_v1, %v753_v39  ;;  %vm1040_vm8 = vcmp.gt.f32.partialorder %v1024_v47, 0.0  ;;  %v790_v21 = vpop.permute.xlu1 %789 }
 0x384   :  { %v4838_v58 = vsel %vm1085_vm9, %v1069_v30, -1e+30  ;;  %v4842_v46 = vsel %vm1084_vm11, %v1068_v6, -1e+30  ;;  %v1070_v52 = vsel %vm1038_vm14, %v1022_v29, %v1054_v45  ;;  %v1056_v57 = vmul.f32 0.2, %v1024_v47 }
 0x385   :  { %v1110_v10 = vsel %vm1106_vm10, %v4838_v58, -inf  ;;  %v1107_v55 = vsel %vm1106_vm10, %v4842_v46, -inf  ;;  %v4850_v7 = vsel %vm1084_vm11, %v1070_v52, -1e+30  ;;  %v1071_v48 = vsel %vm1039_vm15, %v1023_v14, %v1055_v50 }
 0x386   :  { %1111 = vmax.xlane.f32.xlu1 %v1110_v10  ;;  %1108 = vmax.xlane.f32.xlu0 %v1107_v55  ;;  %vm1042_vm12 = vcmp.gt.f32.partialorder %v1026_v54, 0.0  ;;  %v1058_v59 = vmul.f32 0.2, %v1026_v54  ;;  %v977_v23 = vcombine.high %v4825_v33, %v4825_v33  ;;  %v1072_v60 = vsel %vm1040_vm8, %v1024_v47, %v1056_v57 }
 0x387   :  { %v1025_v4 = vadd.f32 %v991_v41, %v4796_v5  ;;  %v1028_v39 = vadd.f32 %v999_v17, %v4800_v63  ;;  %v4860_v61 = vsel %vm1084_vm11, %v1072_v60, -1e+30  ;;  %v1113_v40 = vsel %vm1106_vm10, %v4850_v7, -inf }
 0x388   :  { %v1074_v36 = vsel %vm1042_vm12, %v1026_v54, %v1058_v59  ;;  %v1027_v37 = vadd.f32 %v995_v1, %v4798_v8  ;;  %v1119_v13 = vsel %vm1106_vm10, %v4860_v61, -inf  ;;  %v4869_v12 = vsel %vm1085_vm9, %v1071_v48, -1e+30  ;;  %v801_v48 = vpop.permute.xlu1 %800 }
 0x389   :  { %vm1041_vm8 = vcmp.gt.f32.partialorder %v1025_v4, 0.0  ;;  %v1057_v5 = vmul.f32 0.2, %v1025_v4  ;;  %v979_v63 = vcombine.high %v975_v51, %v975_v51  ;;  %v4873_v26 = vsel %vm1084_vm11, %v1074_v36, -1e+30 }
 0x38a   :  { %1120 = vmax.xlane.f32.xlu0 %v1119_v13  ;;  %1114 = vmax.xlane.f32.xlu1 %v1113_v40  ;;  %vm1044_vm13 = vcmp.gt.f32.partialorder %v1028_v39, 0.0  ;;  %v1060_v38 = vmul.f32 0.2, %v1028_v39  ;;  %v1059_v8 = vmul.f32 0.2, %v1027_v37  ;;  %v1029_v0 = vadd.f32 %v999_v17, %v4802_v9 }
 0x38b   :  { %v1073_v33 = vsel %vm1041_vm8, %v1025_v4, %v1057_v5  ;;  %v1007_v2 = vrot.slane %v977_v23, %v4753_v62  ;;  %vm1043_vm14 = vcmp.gt.f32.partialorder %v1027_v37, 0.0  ;;  %v1003_v25 = vrot.slane %v975_v51, %v4753_v62 }
 0x38c   :  { %v1076_v3 = vsel %vm1044_vm13, %v1028_v39, %v1060_v38  ;;  %v1116_v11 = vsel %vm1106_vm10, %v4869_v12, -inf  ;;  %v1125_v15 = vsel %vm1106_vm10, %v4873_v26, -inf  ;;  %v4884_v41 = vsel %vm1085_vm9, %v1073_v33, -1e+30 }
 0x38d   :  { %vm1045_vm15 = vcmp.gt.f32.partialorder %v1029_v0, 0.0  ;;  %v4888_v9 = vsel %vm1084_vm11, %v1076_v3, -1e+30  ;;  %v1061_v28 = vmul.f32 0.2, %v1029_v0  ;;  %v1032_v17 = vadd.f32 %v1007_v2, %v786_v44 }
 0x38e   :  { %1117 = vmax.xlane.f32.xlu1 %v1116_v11  ;;  %1126 = vmax.xlane.f32.xlu0 %v1125_v15  ;;  %v1011_v29 = vrot.slane %v979_v63, %v4753_v62  ;;  %v1075_v14 = vsel %vm1043_vm14, %v1027_v37, %v1059_v8  ;;  %v1030_v1 = vadd.f32 %v1003_v25, %v4822_v16  ;;  %v1122_v30 = vsel %vm1106_vm10, %v4884_v41, -inf }
 0x38f   :  { %v1033_v42 = vadd.f32 %v1007_v2, %v790_v21  ;;  %v1031_v19 = vadd.f32 %v1003_v25, %v4804_v34  ;;  %v1077_v47 = vsel %vm1045_vm15, %v1029_v0, %v1061_v28  ;;  %vm1048_vm12 = vcmp.gt.f32.partialorder %v1032_v17, 0.0 }
 0x390   :  { %v1064_v45 = vmul.f32 0.2, %v1032_v17  ;;  %v1131_v6 = vsel %vm1106_vm10, %v4888_v9, -inf  ;;  %vm1046_vm8 = vcmp.gt.f32.partialorder %v1030_v1, 0.0  ;;  %v1062_v50 = vmul.f32 0.2, %v1030_v1 }
 0x391   :  { %v4899_v44 = vsel %vm1085_vm9, %v1075_v14, -1e+30  ;;  %v4903_v34 = vsel %vm1085_vm9, %v1077_v47, -1e+30  ;;  %v1034_v16 = vadd.f32 %v1011_v29, %v797_v56  ;;  %v1065_v10 = vmul.f32 0.2, %v1033_v42 }
 0x392   :  { %1123 = vmax.xlane.f32.xlu1 %v1122_v30  ;;  %1132 = vmax.xlane.f32.xlu0 %v1131_v6  ;;  %v1080_v54 = vsel %vm1048_vm12, %v1032_v17, %v1064_v45  ;;  %v1078_v52 = vsel %vm1046_vm8, %v1030_v1, %v1062_v50  ;;  %v1063_v55 = vmul.f32 0.2, %v1031_v19  ;;  %vm1049_vm13 = vcmp.gt.f32.partialorder %v1033_v42, 0.0 }
 0x393   :  { %vm1047_vm14 = vcmp.gt.f32.partialorder %v1031_v19, 0.0  ;;  %v1128_v57 = vsel %vm1106_vm10, %v4899_v44, -inf  ;;  %v1134_v51 = vsel %vm1106_vm10, %v4903_v34, -inf  ;;  %v4911_v59 = vsel %vm1084_vm11, %v1080_v54, -1e+30 }
 0x394   :  { %v4915_v23 = vsel %vm1084_vm11, %v1078_v52, -1e+30  ;;  %v1081_v60 = vsel %vm1049_vm13, %v1033_v42, %v1065_v10  ;;  %v1079_v4 = vsel %vm1047_vm14, %v1031_v19, %v1063_v55  ;;  %v1066_v39 = vmul.f32 0.2, %v1034_v16 }
 0x395   :  { %v1035_v56 = vadd.f32 %v1011_v29, %v801_v48  ;;  %vm1050_vm15 = vcmp.gt.f32.partialorder %v1034_v16, 0.0  ;;  %v1143_v40 = vsel %vm1106_vm10, %v4911_v59, -inf  ;;  %v1137_v36 = vsel %vm1106_vm10, %v4915_v23, -inf }
 0x396   :  { %1129 = vmax.xlane.f32.xlu1 %v1128_v57  ;;  %1135 = vmax.xlane.f32.xlu0 %v1134_v51  ;;  %v4923_v37 = vsel %vm1085_vm9, %v1081_v60, -1e+30  ;;  %v4927_v13 = vsel %vm1085_vm9, %v1079_v4, -1e+30  ;;  %v1082_v5 = vsel %vm1050_vm15, %v1034_v16, %v1066_v39  ;;  %vm2807_vm8 = vcmask 195584  }
 0x397   :  { %v1067_v63 = vmul.f32 0.2, %v1035_v56  ;;  %vm1051_vm12 = vcmp.gt.f32.partialorder %v1035_v56, 0.0  ;;  %v1146_v38 = vsel %vm1106_vm10, %v4923_v37, -inf  ;;  %v1140_v33 = vsel %vm1106_vm10, %v4927_v13, -inf }
 0x398   :  { %v4935_v8 = vsel %vm1084_vm11, %v1082_v5, -1e+30  ;;  %vm2812_vm13 = vcmask 326656   ;;  %vm2815_vm14 = vcmask 392192   ;;  %vm2818_vm15 = vcmask 457728  }
 0x399   :  { %v1083_v0 = vsel %vm1051_vm12, %v1035_v56, %v1067_v63  ;;  %v1149_v2 = vsel %vm1106_vm10, %v4935_v8, -inf }
 0x39a   :  { %1144 = vmax.xlane.f32.xlu0 %v1143_v40  ;;  %1138 = vmax.xlane.f32.xlu1 %v1137_v36  ;;  %v4941_v3 = vsel %vm1085_vm9, %v1083_v0, -1e+30 }
 0x39b   :  { %v1152_v25 = vsel %vm1106_vm10, %v4941_v3, -inf }
 0x39e   :  { %1147 = vmax.xlane.f32.xlu0 %v1146_v38  ;;  %1141 = vmax.xlane.f32.xlu1 %v1140_v33 }
 0x3a2   :  { %1150 = vmax.xlane.f32.xlu1 %v1149_v2 }
 0x3a6   :  { %1153 = vmax.xlane.f32.xlu1 %v1152_v25 }
 0x413   :  { %v1112_v11 = vpop.xlane.xlu1 %1111  ;;  %v1109_v15 = vpop.xlane.xlu0 %1108 }
 0x414   :  { %v1156_v21 = vsub.f32 %v4838_v58, %v1112_v11  ;;  %v1155_v28 = vsub.f32 %v4842_v46, %v1109_v15 }
 0x416   :  { %v1173_v17 = vmul.f32 1.442695, %v1156_v21  ;;  %v1171_v29 = vmul.f32 1.442695, %v1155_v28 }
 0x417   :  { %v1121_v14 = vpop.xlane.xlu0 %1120  ;;  %v1115_v1 = vpop.xlane.xlu1 %1114 }
 0x418   :  { %4132 = vpow2.f32 %v1173_v17  ;;  %v1159_v42 = vsub.f32 %v4860_v61, %v1121_v14  ;;  %v1157_v19 = vsub.f32 %v4850_v7, %v1115_v1 }
 0x419   :  { %4134 = vpow2.f32 %v1171_v29 }
 0x41a   :  { %v1175_v47 = vmul.f32 1.442695, %v1157_v19  ;;  %v1179_v45 = vmul.f32 1.442695, %v1159_v42 }
 0x41b   :  { %v1118_v30 = vpop.xlane.xlu1 %1117  ;;  %v1127_v6 = vpop.xlane.xlu0 %1126 }
 0x41c   :  { %v1158_v50 = vsub.f32 %v4869_v12, %v1118_v30  ;;  %v1161_v58 = vsub.f32 %v4873_v26, %v1127_v6  ;;  %4136 = vpow2.f32 %v1175_v47 }
 0x41d   :  { %4138 = vpow2.f32 %v1179_v45 }
 0x41e   :  { %v1177_v46 = vmul.f32 1.442695, %v1158_v50  ;;  %v1183_v16 = vmul.f32 1.442695, %v1161_v58 }
 0x41f   :  { %v1124_v54 = vpop.xlane.xlu1 %1123  ;;  %v1133_v52 = vpop.xlane.xlu0 %1132 }
 0x420   :  { %4140 = vpow2.f32 %v1177_v46  ;;  %v1160_v61 = vsub.f32 %v4884_v41, %v1124_v54  ;;  %v1163_v7 = vsub.f32 %v4888_v9, %v1133_v52 }
 0x421   :  { %4142 = vpow2.f32 %v1183_v16 }
 0x422   :  { %v4953_v10 = vpop.eup %4132  ;;  %v1181_v55 = vmul.f32 1.442695, %v1160_v61  ;;  %v1187_v12 = vmul.f32 1.442695, %v1163_v7 }
 0x423   :  { %v4955_v57 = vpop.eup %4134  ;;  %v1130_v51 = vpop.xlane.xlu1 %1129  ;;  %v1206_v48 = vsel %vm1106_vm10, %v4953_v10, 0.0 }
 0x424   :  { %v1136_v26 = vpop.xlane.xlu0 %1135  ;;  %4144 = vpow2.f32 %v1181_v55  ;;  %v1162_v60 = vsub.f32 %v4899_v44, %v1130_v51  ;;  %v1203_v41 = vsel %vm1106_vm10, %v4955_v57, 0.0  ;;  %1207 = vadd.xlane.f32.xlu1 %v1206_v48 }
 0x425   :  { %v1164_v4 = vsub.f32 %v4903_v34, %v1136_v26  ;;  %1204 = vadd.xlane.f32.xlu0 %v1203_v41  ;;  %4146 = vpow2.f32 %v1187_v12 }
 0x426   :  { %v1185_v9 = vmul.f32 1.442695, %v1162_v60  ;;  %v4963_v39 = vpop.eup %4136 }
 0x427   :  { %v1189_v56 = vmul.f32 1.442695, %v1164_v4  ;;  %v1139_v36 = vpop.xlane.xlu1 %1138  ;;  %v1209_v44 = vsel %vm1106_vm10, %v4963_v39, 0.0  ;;  %v4969_v34 = vpop.eup %4138 }
 0x428   :  { %v1145_v40 = vpop.xlane.xlu0 %1144  ;;  %4148 = vpow2.f32 %v1185_v9  ;;  %v1165_v63 = vsub.f32 %v4915_v23, %v1139_v36  ;;  %v1215_v15 = vsel %vm1106_vm10, %v4969_v34, 0.0 }
 0x429   :  { %v1167_v5 = vsub.f32 %v4911_v59, %v1145_v40  ;;  %1210 = vadd.xlane.f32.xlu0 %v1209_v44  ;;  %4150 = vpow2.f32 %v1189_v56 }
 0x42a   :  { %v4971_v38 = vpop.eup %4140  ;;  %v1191_v33 = vmul.f32 1.442695, %v1165_v63 }
 0x42b   :  { %v1195_v0 = vmul.f32 1.442695, %v1167_v5  ;;  %v1142_v25 = vpop.xlane.xlu1 %1141  ;;  %v1212_v11 = vsel %vm1106_vm10, %v4971_v38, 0.0  ;;  %v4979_v21 = vpop.eup %4142 }
 0x42c   :  { %v1148_v2 = vpop.xlane.xlu0 %1147  ;;  %v1166_v23 = vsub.f32 %v4927_v13, %v1142_v25  ;;  %1213 = vadd.xlane.f32.xlu1 %v1212_v11  ;;  %4152 = vpow2.f32 %v1191_v33  ;;  %v1221_v13 = vsel %vm1106_vm10, %v4979_v21, 0.0 }
 0x42d   :  { %v1168_v59 = vsub.f32 %v4923_v37, %v1148_v2  ;;  %1216 = vadd.xlane.f32.xlu0 %v1215_v15  ;;  %4154 = vpow2.f32 %v1195_v0 }
 0x42e   :  { %v4981_v28 = vpop.eup %4144  ;;  %v1193_v17 = vmul.f32 1.442695, %v1166_v23 }
 0x42f   :  { %v1197_v29 = vmul.f32 1.442695, %v1168_v59  ;;  %v1151_v14 = vpop.xlane.xlu1 %1150  ;;  %v1218_v1 = vsel %vm1106_vm10, %v4981_v28, 0.0  ;;  %v4988_v42 = vpop.eup %4146 }
 0x430   :  { %v1169_v37 = vsub.f32 %v4935_v8, %v1151_v14  ;;  %1219 = vadd.xlane.f32.xlu1 %v1218_v1  ;;  %4156 = vpow2.f32 %v1193_v17  ;;  %v1227_v8 = vsel %vm1106_vm10, %v4988_v42, 0.0 }
 0x431   :  { %1222 = vadd.xlane.f32.xlu0 %v1221_v13  ;;  %4158 = vpow2.f32 %v1197_v29 }
 0x432   :  { %v4990_v19 = vpop.eup %4148  ;;  %v1199_v47 = vmul.f32 1.442695, %v1169_v37 }
 0x433   :  { %v1154_v45 = vpop.xlane.xlu1 %1153  ;;  %v1224_v30 = vsel %vm1106_vm10, %v4990_v19, 0.0  ;;  %v4997_v50 = vpop.eup %4150 }
 0x434   :  { %4160 = vpow2.f32 %v1199_v47  ;;  %v1170_v6 = vsub.f32 %v4941_v3, %v1154_v45  ;;  %1225 = vadd.xlane.f32.xlu1 %v1224_v30  ;;  %v1230_v16 = vsel %vm1106_vm10, %v4997_v50, 0.0 }
 0x435   :  { %1228 = vadd.xlane.f32.xlu0 %v1227_v8 }
 0x436   :  { %v1201_v58 = vmul.f32 1.442695, %v1170_v6  ;;  %v4999_v46 = vpop.eup %4152 }
 0x437   :  { %v1233_v54 = vsel %vm1106_vm10, %v4999_v46, 0.0  ;;  %v5005_v52 = vpop.eup %4154 }
 0x438   :  { %4162 = vpow2.f32 %v1201_v58  ;;  %1234 = vadd.xlane.f32.xlu1 %v1233_v54  ;;  %v1239_v61 = vsel %vm1106_vm10, %v5005_v52, 0.0 }
 0x439   :  { %1231 = vadd.xlane.f32.xlu0 %v1230_v16 }
 0x43a   :  { %v5007_v3 = vpop.eup %4156 }
 0x43b   :  { %v1236_v7 = vsel %vm1106_vm10, %v5007_v3, 0.0  ;;  %v5013_v55 = vpop.eup %4158 }
 0x43c   :  { %1237 = vadd.xlane.f32.xlu1 %v1236_v7  ;;  %v1242_v26 = vsel %vm1106_vm10, %v5013_v55, 0.0 }
 0x43d   :  { %1240 = vadd.xlane.f32.xlu0 %v1239_v61 }
 0x43e   :  { %v5015_v12 = vpop.eup %4160 }
 0x43f   :  { %v1245_v51 = vsel %vm1106_vm10, %v5015_v12, 0.0 }
 0x440   :  { %1246 = vadd.xlane.f32.xlu1 %v1245_v51 }
 0x441   :  { %1243 = vadd.xlane.f32.xlu0 %v1242_v26 }
 0x442   :  { %v5021_v48 = vpop.eup %4162 }
 0x443   :  { %v1248_v60 = vsel %vm1106_vm10, %v5021_v48, 0.0 }
 0x444   :  { %1249 = vadd.xlane.f32.xlu1 %v1248_v60 }
 0x4b1   :  { %v1208_v4 = vpop.xlane.xlu1 %1207 }
 0x4b2   :  { %v1205_v41 = vpop.xlane.xlu0 %1204  ;;  %4164 = vrcp.f32 %v1208_v4 }
 0x4b3   :  { %4166 = vrcp.f32 %v1205_v41 }
 0x4b6   :  { %v1211_v9 = vpop.xlane.xlu0 %1210 }
 0x4b7   :  { %4168 = vrcp.f32 %v1211_v9 }
 0x4b9   :  { %v1214_v56 = vpop.xlane.xlu1 %1213 }
 0x4ba   :  { %v1217_v40 = vpop.xlane.xlu0 %1216  ;;  %4170 = vrcp.f32 %v1214_v56 }
 0x4bb   :  { %4172 = vrcp.f32 %v1217_v40 }
 0x4bc   :  { %v4165_v36 = vpop.eup %4164 }
 0x4bd   :  { %v4167_v5 = vpop.eup %4166  ;;  %v1220_v63 = vpop.xlane.xlu1 %1219  ;;  %v1268_v44 = vmul.f32 %v4165_v36, %v4953_v10 }
 0x4be   :  { %v1223_v33 = vpop.xlane.xlu0 %1222  ;;  %4174 = vrcp.f32 %v1220_v63  ;;  %v1267_v0 = vmul.f32 %v4167_v5, %v4955_v57 }
 0x4bf   :  { %4176 = vrcp.f32 %v1223_v33 }
 0x4c0   :  { %3963 = vmatprep.mubr.msk.f32.mxu1 %vm1106_vm10, %v1267_v0 }
 0x4c1   :  { %v4169_v2 = vpop.eup %4168  ;;  %3964 = vmatmul.mubr.msk.f32.vlgmr.msra.gmra.mrb[0].mxu1 %vm1106_vm10, %v1268_v44  ;;  %v1226_v25 = vpop.xlane.xlu1 %1225 }
 0x4c2   :  { %4063 = vmatpush3.bf16.msra.mxu1 %v4495_v31  ;;  %v1229_v11 = vpop.xlane.xlu0 %1228  ;;  %4178 = vrcp.f32 %v1226_v25  ;;  %v1269_v59 = vmul.f32 %v4169_v2, %v4963_v39 }
 0x4c3   :  { %4180 = vrcp.f32 %v1229_v11  ;;  %4065 = vmatprep.subr.bf16.mxu1 %v4668_v43 }
 0x4c4   :  { %v4171_v10 = vpop.eup %4170  ;;  %3970 = vmatprep.mubr.msk.f32.mxu1 %vm1106_vm10, %v1269_v59 }
 0x4c5   :  { %v4173_v57 = vpop.eup %4172  ;;  %v1270_v23 = vmul.f32 %v4171_v10, %v4971_v38  ;;  %v1235_v17 = vpop.xlane.xlu1 %1234 }
 0x4c6   :  { %v1232_v15 = vpop.xlane.xlu0 %1231  ;;  %v1271_v29 = vmul.f32 %v4173_v57, %v4969_v34 }
 0x4c7   :  { %4182 = vrcp.f32 %v1232_v15  ;;  %3971 = vmatmul.mubr.msk.f32.vlgmr.msra.gmra.mrb[2].mxu1 %vm1106_vm10, %v1270_v23 }
 0x4c8   :  { %v4175_v31 = vpop.eup %4174  ;;  %4184 = vrcp.f32 %v1235_v17  ;;  %4067 = vmatpush3.bf16.msra.mxu1 %v4668_v43  ;;  %3977 = vmatprep.mubr.msk.f32.mxu1 %vm1106_vm10, %v1271_v29 }
 0x4c9   :  { %v4177_v39 = vpop.eup %4176  ;;  %v1272_v14 = vmul.f32 %v4175_v31, %v4981_v28  ;;  %4069 = vmatprep.subr.bf16.mxu1 %v4670_v53  ;;  %v1238_v38 = vpop.xlane.xlu1 %1237 }
 0x4ca   :  { %v1241_v1 = vpop.xlane.xlu0 %1240  ;;  %v1273_v37 = vmul.f32 %v4177_v39, %v4979_v21 }
 0x4cb   :  { %4186 = vrcp.f32 %v1241_v1  ;;  %3978 = vmatmul.mubr.msk.f32.vlgmr.msra.gmra.mrb[4].mxu1 %vm1106_vm10, %v1272_v14 }
 0x4cc   :  { %v4179_v34 = vpop.eup %4178  ;;  %4188 = vrcp.f32 %v1238_v38  ;;  %4071 = vmatpush3.bf16.msra.mxu1 %v4670_v53  ;;  %3984 = vmatprep.mubr.msk.f32.mxu1 %vm1106_vm10, %v1273_v37 }
 0x4cd   :  { %v4181_v43 = vpop.eup %4180  ;;  %v1274_v13 = vmul.f32 %v4179_v34, %v4990_v19  ;;  %4077 = vmatprep.subr.bf16.mxu1 %v4661_v18  ;;  %v1247_v47 = vpop.xlane.xlu1 %1246 }
 0x4ce   :  { %v1244_v28 = vpop.xlane.xlu0 %1243  ;;  %v1275_v45 = vmul.f32 %v4181_v43, %v4988_v42 }
 0x4cf   :  { %4190 = vrcp.f32 %v1244_v28  ;;  %3985 = vmatmul.mubr.msk.f32.vlgmr.msra.gmra.mrb[6].mxu1 %vm1106_vm10, %v1274_v13 }
 0x4d0   :  { %4192 = vrcp.f32 %v1247_v47  ;;  %3991 = vmatprep.mubr.msk.f32.mxu0 %vm1106_vm10, %v1275_v45  ;;  %4079 = vmatpush3.bf16.msra.mxu1 %v4661_v18 }
 0x4d1   :  { %v4183_v53 = vpop.eup %4182  ;;  %4085 = vmatprep.subr.bf16.mxu1 %v4663_v24  ;;  %v1250_v30 = vpop.xlane.xlu1 %1249 }
 0x4d2   :  { %v4185_v21 = vpop.eup %4184  ;;  %v1276_v19 = vmul.f32 %v4183_v53, %v4997_v50  ;;  %4194 = vrcp.f32 %v1250_v30 }
 0x4d3   :  { %v1277_v6 = vmul.f32 %v4185_v21, %v4999_v46 }
 0x4d4   :  { %3992 = vmatmul.mubr.msk.f32.vlgmr.msra.gmra.mrb[2].mxu0 %vm1106_vm10, %v1276_v19 }
 0x4d5   :  { %v4187_v42 = vpop.eup %4186  ;;  %3998 = vmatprep.mubr.msk.f32.mxu1 %vm1106_vm10, %v1277_v6  ;;  %4083 = vmatpush3.bf16.msra.mxu0 %v4600_v22 }
 0x4d6   :  { %v4189_v8 = vpop.eup %4188  ;;  %v1279_v18 = vmul.f32 %v4187_v42, %v5005_v52 }
 0x4d7   :  { %v1278_v58 = vmul.f32 %v4189_v8, %v5007_v3 }
 0x4d8   :  { %4005 = vmatprep.mubr.msk.f32.mxu0 %vm1106_vm10, %v1279_v18 }
 0x4d9   :  { %v4191_v16 = vpop.eup %4190  ;;  %3999 = vmatmul.mubr.msk.f32.vlgmr.msra.gmra.mrb[8].mxu1 %vm1106_vm10, %v1278_v58 }
 0x4da   :  { %v4193_v50 = vpop.eup %4192  ;;  %v1280_v46 = vmul.f32 %v4191_v16, %v5013_v55  ;;  %4087 = vmatpush3.bf16.msra.mxu1 %v4663_v24 }
 0x4db   :  { %v1281_v54 = vmul.f32 %v4193_v50, %v5015_v12 }
 0x4dc   :  { %4006 = vmatmul.mubr.msk.f32.vlgmr.msra.gmra.mrb[4].mxu0 %vm1106_vm10, %v1280_v46  ;;  %v4195_v22 = vpop.eup %4194 }
 0x4dd   :  { %4012 = vmatprep.mubr.msk.f32.mxu1 %vm1106_vm10, %v1281_v54  ;;  %v1282_v52 = vmul.f32 %v4195_v22, %v5021_v48 }
 0x4df   :  { %4013 = vmatmul.mubr.msk.f32.vlgmr.msra.gmra.mrb[10].mxu1 %vm1106_vm10, %v1282_v52 }
 0x594   :  { %v3965_v3 = vpop.f32.mrb[0].mxu1 }
 0x595   :  { %v1627_v61 = vpop.f32.mrb[1].mxu1 }
 0x59a   :  { %v3972_v7 = vpop.f32.mrb[2].mxu1 }
 0x59b   :  { %v1708_v51 = vpop.f32.mrb[3].mxu1 }
 0x59e   :  { %v3979_v26 = vpop.f32.mrb[4].mxu1 }
 0x59f   :  { %v2339_v60 = vcombine.low %v3965_v3, %v3979_v26  ;;  %v2340_v55 = vcombine.high %v3965_v3, %v3979_v26  ;;  %v1789_v4 = vpop.f32.mrb[5].mxu1 }
 0x5a0   :  { %v2203_v24 = vcombine.low %v1627_v61, %v1789_v4  ;;  %v2204_v41 = vcombine.high %v1627_v61, %v1789_v4 }
 0x5a1   :  { %v2347_v48 = vrot.slane %v2339_v60, %v4350_v20  ;;  %v2354_v63 = vrot.slane %v2340_v55, %v4350_v20 }
 0x5a2   :  { %v3986_v12 = vpop.f32.mrb[6].mxu1  ;;  %v2211_v0 = vrot.slane %v2203_v24, %v4350_v20  ;;  %v2218_v2 = vrot.slane %v2204_v41, %v4350_v20 }
 0x5a3   :  { %v2355_v9 = vcombine.low %v3972_v7, %v3986_v12  ;;  %v2356_v56 = vcombine.high %v3972_v7, %v3986_v12  ;;  %v1870_v40 = vpop.f32.mrb[7].mxu1 }
 0x5a4   :  { %v2219_v36 = vcombine.low %v1708_v51, %v1870_v40  ;;  %v2220_v5 = vcombine.high %v1708_v51, %v1870_v40 }
 0x5a5   :  { %v2363_v44 = vrot.slane %v2355_v9, %v4350_v20  ;;  %v2370_v33 = vrot.slane %v2356_v56, %v4350_v20 }
 0x5a6   :  { %v2227_v25 = vrot.slane %v2219_v36, %v4350_v20  ;;  %v2234_v11 = vrot.slane %v2220_v5, %v4350_v20 }
 0x5a7   :  { %v2403_v59 = vcombine.low %v2347_v48, %v2363_v44  ;;  %v2404_v10 = vcombine.high %v2347_v48, %v2363_v44  ;;  %v2419_v57 = vcombine.low %v2354_v63, %v2370_v33  ;;  %v2420_v23 = vcombine.high %v2354_v63, %v2370_v33  ;;  %v3993_v15 = vpop.f32.mrb[2].mxu0 }
 0x5a8   :  { %v2267_v17 = vcombine.low %v2211_v0, %v2227_v25  ;;  %v2268_v29 = vcombine.high %v2211_v0, %v2227_v25  ;;  %v2283_v31 = vcombine.low %v2218_v2, %v2234_v11  ;;  %v2284_v39 = vcombine.high %v2218_v2, %v2234_v11  ;;  %v1951_v14 = vpop.f32.mrb[3].mxu0 }
 0x5a9   :  { %v2411_v1 = vrot.slane %v2403_v59, %v4355_v27  ;;  %v2418_v38 = vrot.slane %v2404_v10, %v4355_v27  ;;  %v2427_v37 = vrot.slane %v2419_v57, %v4355_v27  ;;  %v2434_v34 = vrot.slane %v2420_v23, %v4355_v27 }
 0x5aa   :  { %v2275_v43 = vrot.slane %v2267_v17, %v4355_v27  ;;  %v2282_v13 = vrot.slane %v2268_v29, %v4355_v27  ;;  %v2291_v28 = vrot.slane %v2283_v31, %v4355_v27  ;;  %v2298_v47 = vrot.slane %v2284_v39, %v4355_v27 }
 0x5ab   :  { %v3872_v45 = vcombine.low %v2411_v1, %v2418_v38  ;;  %v3874_v53 = vcombine.high %v2411_v1, %v2418_v38  ;;  %v3876_v21 = vcombine.low %v2427_v37, %v2434_v34  ;;  %v3878_v19 = vcombine.high %v2427_v37, %v2434_v34 }
 0x5ac   :  { %v3864_v30 = vcombine.low %v2275_v43, %v2282_v13  ;;  %v3866_v6 = vcombine.high %v2275_v43, %v2282_v13  ;;  %v3868_v42 = vcombine.low %v2291_v28, %v2298_v47  ;;  %v3870_v8 = vcombine.high %v2291_v28, %v2298_v47  ;;  %v4000_v18 = vpop.f32.mrb[8].mxu1 }
 0x5ad   :  { %v2619_v58 = vrot.slane %v3872_v45, %v4350_v20  ;;  %v2635_v16 = vrot.slane %v3874_v53, %v4350_v20  ;;  %v2651_v50 = vrot.slane %v3876_v21, %v4350_v20  ;;  %v2667_v46 = vrot.slane %v3878_v19, %v4350_v20  ;;  %v2032_v54 = vpop.f32.mrb[9].mxu1 }
 0x5ae   :  { %v5088_v22 = vrot.slane %v3864_v30, %v4350_v20  ;;  %v5091_v52 = vrot.slane %v3866_v6, %v4350_v20  ;;  %v5094_v3 = vrot.slane %v3868_v42, %v4350_v20  ;;  %v5097_v61 = vrot.slane %v3870_v8, %v4350_v20 }
 0x5af   :  { %v4007_v7 = vpop.f32.mrb[4].mxu0  ;;  %v2676_v51 = vcombine.high %v2619_v58, %v2635_v16  ;;  %v2708_v26 = vcombine.high %v2651_v50, %v2667_v46  ;;  %v2675_v60 = vcombine.low %v2619_v58, %v2635_v16  ;;  %v2707_v55 = vcombine.low %v2651_v50, %v2667_v46 }
 0x5b0   :  { %v2371_v4 = vcombine.low %v3993_v15, %v4007_v7  ;;  %v2372_v24 = vcombine.high %v3993_v15, %v4007_v7  ;;  %v2113_v41 = vpop.f32.mrb[5].mxu0  ;;  %v2540_v12 = vcombine.high %v5088_v22, %v5091_v52  ;;  %v2572_v9 = vcombine.high %v5094_v3, %v5097_v61 }
 0x5b1   :  { %v2235_v56 = vcombine.low %v1951_v14, %v2113_v41  ;;  %v2236_v40 = vcombine.high %v1951_v14, %v2113_v41  ;;  %v2690_v36 = vrot.slane %v2676_v51, %v4355_v27  ;;  %v2722_v5 = vrot.slane %v2708_v26, %v4355_v27 }
 0x5b2   :  { %v2379_v48 = vrot.slane %v2371_v4, %v4350_v20  ;;  %v2386_v63 = vrot.slane %v2372_v24, %v4350_v20  ;;  %v5108_v44 = vrot.slane %v2675_v60, %v4355_v27  ;;  %v5111_v33 = vrot.slane %v2707_v55, %v4355_v27  ;;  %v4014_v25 = vpop.f32.mrb[10].mxu1 }
 0x5b3   :  { %v2243_v0 = vrot.slane %v2235_v56, %v4350_v20  ;;  %v2250_v2 = vrot.slane %v2236_v40, %v4350_v20  ;;  %v2741_v11 = vcombine.low %v2690_v36, %v2722_v5  ;;  %v2742_v59 = vcombine.high %v2690_v36, %v2722_v5  ;;  %v2194_v23 = vpop.f32.mrb[11].mxu1 }
 0x5b4   :  { %v2387_v10 = vcombine.low %v4000_v18, %v4014_v25  ;;  %v2388_v57 = vcombine.high %v4000_v18, %v4014_v25  ;;  %v2740_v15 = vcombine.high %v5108_v44, %v5111_v33  ;;  %v2554_v17 = vrot.slane %v2540_v12, %v4355_v27 }
 0x5b5   :  { %v2251_v29 = vcombine.low %v2032_v54, %v2194_v23  ;;  %v2252_v31 = vcombine.high %v2032_v54, %v2194_v23  ;;  %2759 = vrot.lane.b32.xlu0 %v2741_v11, %s4246_s1  ;;  %v2586_v39 = vrot.slane %v2572_v9, %v4355_v27  ;;  %v2539_v14 = vcombine.low %v5088_v22, %v5091_v52 }
 0x5b6   :  { %v2395_v1 = vrot.slane %v2387_v10, %v4350_v20  ;;  %v2402_v38 = vrot.slane %v2388_v57, %v4350_v20  ;;  %2751 = vrot.lane.b32.xlu1 %v2740_v15, %s4247_s21  ;;  %v2571_v37 = vcombine.low %v5094_v3, %v5097_v61  ;;  %v2739_v34 = vcombine.low %v5108_v44, %v5111_v33  ;;  %v3880_v33 = vld [vmem:[%s5451_s6] ss:$0 sm:$0xff] }
 0x5b7   :  { %v2259_v43 = vrot.slane %v2251_v29, %v4350_v20  ;;  %v2266_v13 = vrot.slane %v2252_v31, %v4350_v20  ;;  %v2605_v28 = vcombine.low %v2554_v17, %v2586_v39  ;;  %v2606_v47 = vcombine.high %v2554_v17, %v2586_v39 }
 0x5b8   :  { %v2435_v45 = vcombine.low %v2379_v48, %v2395_v1  ;;  %v2436_v53 = vcombine.high %v2379_v48, %v2395_v1  ;;  %v2451_v21 = vcombine.low %v2386_v63, %v2402_v38  ;;  %v2452_v19 = vcombine.high %v2386_v63, %v2402_v38 }
 0x5b9   :  { %v2299_v30 = vcombine.low %v2243_v0, %v2259_v43  ;;  %v2300_v6 = vcombine.high %v2243_v0, %v2259_v43  ;;  %v2315_v42 = vcombine.low %v2250_v2, %v2266_v13  ;;  %v2316_v8 = vcombine.high %v2250_v2, %v2266_v13  ;;  %2767 = vrot.lane.b32.xlu0 %v2742_v59, %s4248_s22 }
 0x5ba   :  { %v2443_v18 = vrot.slane %v2435_v45, %v4355_v27  ;;  %v2450_v58 = vrot.slane %v2436_v53, %v4355_v27  ;;  %v2459_v16 = vrot.slane %v2451_v21, %v4355_v27  ;;  %v2466_v50 = vrot.slane %v2452_v19, %v4355_v27  ;;  %2757 = vrot.lane.b32.xlu1 %v2605_v28, %s4246_s1 }
 0x5bb   :  { %v2307_v46 = vrot.slane %v2299_v30, %v4355_v27  ;;  %v2314_v54 = vrot.slane %v2300_v6, %v4355_v27  ;;  %v2323_v22 = vrot.slane %v2315_v42, %v4355_v27  ;;  %v2330_v52 = vrot.slane %v2316_v8, %v4355_v27  ;;  %v2841_v6 = vld [vmem:[%s5452_s7] sm:$0xff]  ;;  %v2842_v42 = vld [vmem:[%s5452_s7 + $0x8] sm:$0xff]  ;;  %v2843_v8 = vld [vmem:[%s5452_s7 + $0x10] sm:$0xff] }
 0x5bc   :  { %v3873_v3 = vcombine.low %v2443_v18, %v2450_v58  ;;  %v3875_v61 = vcombine.high %v2443_v18, %v2450_v58  ;;  %v3877_v7 = vcombine.low %v2459_v16, %v2466_v50  ;;  %v3879_v51 = vcombine.high %v2459_v16, %v2466_v50  ;;  %v2844_v58 = vld [vmem:[%s5452_s7 + $0x18] sm:$0xff]  ;;  %v2845_v50 = vld [vmem:[%s5452_s7 + $0x20] sm:$0xff] }
 0x5bd   :  { %v3865_v26 = vcombine.low %v2307_v46, %v2314_v54  ;;  %v3867_v60 = vcombine.high %v2307_v46, %v2314_v54  ;;  %v3869_v55 = vcombine.low %v2323_v22, %v2330_v52  ;;  %v3871_v4 = vcombine.high %v2323_v22, %v2330_v52  ;;  %v2846_v46 = vld [vmem:[%s5452_s7 + $0x28] sm:$0xff]  ;;  %v2847_v22 = vld [vmem:[%s5452_s7 + $0x30] sm:$0xff]  ;;  %v2848_v52 = vld [vmem:[%s5452_s7 + $0x38] sm:$0xff] }
 0x5be   :  { %v2626_v24 = vrot.slane %v3873_v3, %v4350_v20  ;;  %v2642_v41 = vrot.slane %v3875_v61, %v4350_v20  ;;  %v2658_v12 = vrot.slane %v3877_v7, %v4350_v20  ;;  %v2674_v9 = vrot.slane %v3879_v51, %v4350_v20  ;;  %2765 = vrot.lane.b32.xlu1 %v2606_v47, %s4248_s22 }
 0x5bf   :  { %v5143_v56 = vrot.slane %v2539_v14, %v4355_v27  ;;  %v5146_v40 = vrot.slane %v2571_v37, %v4355_v27  ;;  %v2490_v36 = vrot.slane %v3865_v26, %v4350_v20  ;;  %v2506_v5 = vrot.slane %v3867_v60, %v4350_v20 }
 0x5c0   :  { %v2691_v48 = vcombine.low %v2626_v24, %v2642_v41  ;;  %v2723_v63 = vcombine.low %v2658_v12, %v2674_v9  ;;  %v2522_v0 = vrot.slane %v3869_v55, %v4350_v20  ;;  %v2538_v2 = vrot.slane %v3871_v4, %v4350_v20 }
 0x5c1   :  { %v2604_v25 = vcombine.high %v5143_v56, %v5146_v40  ;;  %v2555_v11 = vcombine.low %v2490_v36, %v2506_v5  ;;  %v2692_v59 = vcombine.high %v2626_v24, %v2642_v41  ;;  %v2724_v10 = vcombine.high %v2658_v12, %v2674_v9 }
 0x5c2   :  { %v2699_v57 = vrot.slane %v2691_v48, %v4355_v27  ;;  %v2731_v23 = vrot.slane %v2723_v63, %v4355_v27  ;;  %v2587_v15 = vcombine.low %v2522_v0, %v2538_v2  ;;  %v2556_v17 = vcombine.high %v2490_v36, %v2506_v5 }
 0x5c3   :  { %2749 = vrot.lane.b32.xlu0 %v2604_v25, %s4247_s21  ;;  %v2563_v29 = vrot.slane %v2555_v11, %v4355_v27  ;;  %v2706_v31 = vrot.slane %v2692_v59, %v4355_v27  ;;  %v2738_v39 = vrot.slane %v2724_v10, %v4355_v27  ;;  %v2588_v14 = vcombine.high %v2522_v0, %v2538_v2 }
 0x5c4   :  { %v2743_v1 = vcombine.low %v2699_v57, %v2731_v23  ;;  %v2595_v38 = vrot.slane %v2587_v15, %v4355_v27  ;;  %v2744_v37 = vcombine.high %v2699_v57, %v2731_v23  ;;  %v2570_v43 = vrot.slane %v2556_v17, %v4355_v27 }
 0x5c5   :  { %v2745_v13 = vcombine.low %v2706_v31, %v2738_v39  ;;  %v2602_v28 = vrot.slane %v2588_v14, %v4355_v27  ;;  %v2746_v47 = vcombine.high %v2706_v31, %v2738_v39  ;;  %v2603_v21 = vcombine.low %v5143_v56, %v5146_v40 }
 0x5c6   :  { %v2607_v45 = vcombine.low %v2563_v29, %v2595_v38  ;;  %v2608_v53 = vcombine.high %v2563_v29, %v2595_v38  ;;  %v4088_v18 = vpack.c.bf16 %v2842_v42, %v2841_v6  ;;  %v4092_v16 = vpack.c.bf16 %v2844_v58, %v2843_v8  ;;  %v5206_v42 = vld [vmem:[%s5454_s9] sm:$0x1] }
 0x5c7   :  { %2775 = vrot.lane.b32.xlu0 %v2743_v1, %s4249_s23  ;;  %v2609_v19 = vcombine.low %v2570_v43, %v2602_v28  ;;  %v2610_v30 = vcombine.high %v2570_v43, %v2602_v28  ;;  %v4096_v54 = vpack.c.bf16 %v2846_v46, %v2845_v50  ;;  %v4100_v3 = vpack.c.bf16 %v2848_v52, %v2847_v22 }
 0x5c8   :  { %2773 = vrot.lane.b32.xlu1 %v2607_v45, %s4249_s23  ;;  %4089 = vmatprep.subr.bf16.mxu0 %v4088_v18 }
 0x5c9   :  { %4091 = vmatpush3.bf16.msra.mxu0 %v4088_v18 }
 0x5ca   :  { %4093 = vmatprep.subr.bf16.mxu0 %v4092_v16 }
 0x5cb   :  { %2783 = vrot.lane.b32.xlu0 %v2744_v37, %s4250_s24 }
 0x5cc   :  { %2781 = vrot.lane.b32.xlu1 %v2608_v53, %s4250_s24  ;;  %s4256_s24 = smov [#allocation2]  }
 0x5cd   :  { %4095 = vmatpush3.bf16.msra.mxu0 %v4092_v16 }
 0x5ce   :  { %4097 = vmatprep.subr.bf16.mxu0 %v4096_v54 }
 0x5cf   :  { %2791 = vrot.lane.b32.xlu0 %v2745_v13, %s4251_s30 }
 0x5d0   :  { %2789 = vrot.lane.b32.xlu1 %v2609_v19, %s4251_s30 }
 0x5d1   :  { %4099 = vmatpush3.bf16.msra.mxu0 %v4096_v54 }
 0x5d2   :  { %4101 = vmatprep.subr.bf16.mxu0 %v4100_v3 }
 0x5d3   :  { %2799 = vrot.lane.b32.xlu0 %v2746_v47, %s4252_s5 }
 0x5d4   :  { %2797 = vrot.lane.b32.xlu1 %v2610_v30, %s4252_s5 }
 0x5d5   :  { %4103 = vmatpush3.bf16.msra.mxu0 %v4100_v3 }
 0x627   :  { %v2760_v61 = vpop.permute.xlu0 %2759 }
 0x628   :  { %v2752_v7 = vpop.permute.xlu1 %2751 }
 0x629   :  { %v2804_v9 = vsel %vm464_vm1, %v2739_v34, %v2752_v7 }
 0x62a   :  { %v2806_v36 = vsel %vm1106_vm10, %v2804_v9, %v2760_v61 }
 0x62b   :  { %v2768_v51 = vpop.permute.xlu0 %2767 }
 0x62c   :  { %v2758_v26 = vpop.permute.xlu1 %2757  ;;  %v2809_v48 = vsel %vm2807_vm8, %v2806_v36, %v2768_v51 }
 0x630   :  { %v2766_v55 = vpop.permute.xlu1 %2765 }
 0x635   :  { %v2750_v60 = vpop.permute.xlu0 %2749 }
 0x636   :  { %v2803_v41 = vsel %vm464_vm1, %v2603_v21, %v2750_v60 }
 0x637   :  { %v2805_v40 = vsel %vm1106_vm10, %v2803_v41, %v2758_v26 }
 0x638   :  { %v2808_v0 = vsel %vm2807_vm8, %v2805_v40, %v2766_v55  ;;  %vm3066_vm8 = vcmask 24576  }
 0x639   :  { %v2776_v4 = vpop.permute.xlu0 %2775 }
 0x63a   :  { %v2774_v24 = vpop.permute.xlu1 %2773  ;;  %v2811_v2 = vsel %vm50_vm0, %v2809_v48, %v2776_v4 }
 0x63b   :  { %v2810_v25 = vsel %vm50_vm0, %v2808_v0, %v2774_v24  ;;  %vm2852_vm0 = vcmask 523264  }
 0x63d   :  { %v2784_v12 = vpop.permute.xlu0 %2783 }
 0x63e   :  { %v2782_v56 = vpop.permute.xlu1 %2781  ;;  %v2814_v44 = vsel %vm2812_vm13, %v2811_v2, %v2784_v12 }
 0x63f   :  { %v2813_v34 = vsel %vm2812_vm13, %v2810_v25, %v2782_v56  ;;  %vm5458_vm13 = vcmask 1047559  }
 0x641   :  { %v2792_v5 = vpop.permute.xlu0 %2791 }
 0x642   :  { %v2790_v63 = vpop.permute.xlu1 %2789  ;;  %v2817_v11 = vsel %vm2815_vm14, %v2814_v44, %v2792_v5 }
 0x643   :  { %v2816_v10 = vsel %vm2815_vm14, %v2813_v34, %v2790_v63  ;;  %vm5459_vm14 = vmmov %vm5458_vm13 }
 0x645   :  { %v2800_v59 = vpop.permute.xlu0 %2799 }
 0x646   :  { %v2820_v57 = vsel %vm2818_vm15, %v2817_v11, %v2800_v59  ;;  %v2798_v23 = vpop.permute.xlu1 %2797 }
 0x647   :  { %v2828_v15 = vadd.f32 %v3880_v33, %v2820_v57  ;;  %v2819_v17 = vsel %vm2818_vm15, %v2816_v10, %v2798_v23  ;;  %vm5460_vm15 = vmmov %vm5458_vm13 }
 0x648   :  { %v2827_v29 = vadd.f32 %v3880_v33, %v2819_v17 }
 0x649   :  { %v2832_v31 = vmin.f32 %v2828_v15, 0.0  ;;  %vm2830_vm12 = vcmp.gt.f32.partialorder %v2828_v15, 0.0 }
 0x64a   :  { %v2831_v39 = vmin.f32 %v2827_v29, 0.0  ;;  %vm2829_vm1 = vcmp.gt.f32.partialorder %v2827_v29, 0.0 }
 0x64b   :  { %v2835_v14 = vmul.f32 1.442695, %v2832_v31 }
 0x64c   :  { %v2833_v1 = vmul.f32 1.442695, %v2831_v39 }
 0x64d   :  { %4196 = vpow2.f32 %v2835_v14 }
 0x64e   :  { %4198 = vpow2.f32 %v2833_v1 }
 0x657   :  { %v4197_v38 = vpop.eup %4196 }
 0x658   :  { %v4199_v37 = vpop.eup %4198  ;;  %v3882_v43 = vadd.f32 -1.0, %v4197_v38 }
 0x659   :  { %v3881_v13 = vadd.f32 -1.0, %v4199_v37 }
 0x65a   :  { %v2840_v47 = vsel %vm2830_vm12, %v2828_v15, %v3882_v43 }
 0x65b   :  { %v2839_v28 = vsel %vm2829_vm1, %v2827_v29, %v3881_v13 }
 0x65c   :  { %4031 = vmatprep.mubr.msk.f32.mxu0 %vm2852_vm0, %v2839_v28 }
 0x65d   :  { %4032 = vmatmul.mubr.msk.f32.vlgmr.msra.gmra.mrb[6].mxu0 %vm2852_vm0, %v2840_v47  ;;  %vm5461_vm0 = vmmov %vm5458_vm13 }
 0x730   :  { %v4033_v45 = vpop.f32.mrb[6].mxu0 }
 0x731   :  { %v2985_v53 = vcombine.high %v4033_v45, %v4033_v45  ;;  %v2992_v21 = vrot.slane %v4033_v45, %v4807_v35  ;;  %v2925_v19 = vpop.f32.mrb[7].mxu0 }
 0x732   :  { %v2936_v30 = vcombine.high %v2925_v19, %v2925_v19  ;;  %v2943_v6 = vrot.slane %v2925_v19, %v4807_v35 }
 0x733   :  { %v2999_v8 = vrot.slane %v2985_v53, %v4807_v35  ;;  %v3000_v18 = vcombine.high %v2992_v21, %v2992_v21  ;;  %v5210_v58 = vrot.slane %v2992_v21, %v4807_v35 }
 0x734   :  { %v2950_v16 = vrot.slane %v2936_v30, %v4807_v35  ;;  %v2951_v50 = vcombine.high %v2943_v6, %v2943_v6  ;;  %v5214_v46 = vrot.slane %v2943_v6, %v4807_v35 }
 0x735   :  { %v3001_v54 = vcombine.high %v2999_v8, %v2999_v8  ;;  %v5217_v22 = vrot.slane %v2999_v8, %v4807_v35  ;;  %v5220_v52 = vrot.slane %v3000_v18, %v4807_v35  ;;  %v3123_v3 = vmul.f32 %v5210_v58, %v5206_v42 }
 0x736   :  { %v2952_v61 = vcombine.high %v2950_v16, %v2950_v16  ;;  %v5225_v7 = vrot.slane %v2950_v16, %v4807_v35  ;;  %v5228_v51 = vrot.slane %v2951_v50, %v4807_v35  ;;  %v3115_v26 = vmul.f32 %v5214_v46, %v5206_v42 }
 0x737   :  { %v3155_v60 = vsel %vm3066_vm8, %v3123_v3, 0.0  ;;  %v3127_v55 = vmul.f32 %v5217_v22, %v5206_v42  ;;  %v3124_v4 = vmul.f32 %v5220_v52, %v5206_v42  ;;  %v5241_v41 = vrot.slane %v3001_v54, %v4807_v35 }
 0x738   :  { %v5238_v24 = vrot.slane %v2952_v61, %v4807_v35  ;;  %3156 = vadd.xlane.f32.xlu0 %v3155_v60  ;;  %v3116_v9 = vmul.f32 %v5228_v51, %v5206_v42  ;;  %v3131_v56 = vsel %vm3066_vm8, %v3115_v26, 0.0  ;;  %v3119_v40 = vmul.f32 %v5225_v7, %v5206_v42 }
 0x739   :  { %v3167_v12 = vsel %vm3066_vm8, %v3127_v55, 0.0  ;;  %v3382_v36 = vcombine.low %v5214_v46, %v5228_v51  ;;  %v3885_v5 = vcombine.high %v5214_v46, %v5228_v51  ;;  %v3158_v48 = vsel %vm3066_vm8, %v3124_v4, 0.0 }
 0x73a   :  { %3168 = vadd.xlane.f32.xlu1 %v3167_v12  ;;  %v5256_v63 = vcombine.high %v5210_v58, %v5210_v58  ;;  %v3384_v0 = vcombine.low %v5225_v7, %v5238_v24  ;;  %v3886_v2 = vcombine.high %v5225_v7, %v5238_v24  ;;  %v3431_v33 = vcombine.low %v5210_v58, %v5220_v52 }
 0x73b   :  { %v3392_v25 = vrot.slane %v3382_v36, %v4807_v35  ;;  %v3399_v44 = vrot.slane %v3885_v5, %v4807_v35  ;;  %v3887_v34 = vcombine.high %v5210_v58, %v5220_v52  ;;  %v3134_v11 = vsel %vm3066_vm8, %v3116_v9, 0.0  ;;  %v2849_v5 = vld [vmem:[%s5453_s8] sm:$0x1] }
 0x73c   :  { %3132 = vadd.xlane.f32.xlu0 %v3131_v56  ;;  %v5271_v59 = vcombine.high %v5220_v52, %v5220_v52  ;;  %v3406_v10 = vrot.slane %v3384_v0, %v4807_v35  ;;  %v3413_v57 = vrot.slane %v3886_v2, %v4807_v35  ;;  %v3433_v15 = vcombine.low %v5217_v22, %v5241_v41 }
 0x73d   :  { %v3414_v23 = vcombine.low %v3392_v25, %v3399_v44  ;;  %v3888_v17 = vcombine.high %v5217_v22, %v5241_v41  ;;  %v3441_v29 = vrot.slane %v3431_v33, %v4807_v35  ;;  %v3125_v31 = vmul.f32 %v5256_v63, %v5206_v42 }
 0x73e   :  { %3135 = vadd.xlane.f32.xlu1 %v3134_v11  ;;  %v3415_v39 = vcombine.low %v3406_v10, %v3413_v57  ;;  %v3448_v14 = vrot.slane %v3887_v34, %v4807_v35  ;;  %v2981_v1 = vcombine.high %v5214_v46, %v5214_v46  ;;  %v3455_v38 = vrot.slane %v3433_v15, %v4807_v35 }
 0x73f   :  { %v3462_v37 = vrot.slane %v3888_v17, %v4807_v35  ;;  %v3143_v43 = vsel %vm3066_vm8, %v3119_v40, 0.0  ;;  %v3126_v13 = vmul.f32 %v5271_v59, %v5206_v42  ;;  %v3422_v45 = vrot.slane %v3414_v23, %v4807_v35 }
 0x740   :  { %3159 = vadd.xlane.f32.xlu0 %v3158_v48  ;;  %v3429_v28 = vrot.slane %v3415_v39, %v4807_v35  ;;  %v3463_v47 = vcombine.low %v3441_v29, %v3448_v14  ;;  %v3161_v21 = vsel %vm3066_vm8, %v3125_v31, 0.0  ;;  %v3117_v19 = vmul.f32 %v2981_v1, %v5206_v42 }
 0x741   :  { %v3464_v53 = vcombine.low %v3455_v38, %v3462_v37  ;;  %v5296_v30 = vcombine.high %v5217_v22, %v5217_v22  ;;  %v3164_v16 = vsel %vm3066_vm8, %v3126_v13, 0.0  ;;  %v3128_v50 = vmul.f32 %v5241_v41, %v5206_v42 }
 0x742   :  { %3144 = vadd.xlane.f32.xlu1 %v3143_v43  ;;  %v3430_v6 = vcombine.low %v3422_v45, %v3429_v28  ;;  %v3471_v8 = vrot.slane %v3463_v47, %v4807_v35  ;;  %v2983_v54 = vcombine.high %v5228_v51, %v5228_v51  ;;  %v3137_v61 = vsel %vm3066_vm8, %v3117_v19, 0.0 }
 0x743   :  { %v3478_v18 = vrot.slane %v3464_v53, %v4807_v35  ;;  %v3129_v26 = vmul.f32 %v5296_v30, %v5206_v42  ;;  %v2982_v60 = vcombine.high %v5225_v7, %v5225_v7  ;;  %v3170_v35 = vsel %vm3066_vm8, %v3128_v50, 0.0 }
 0x744   :  { %3162 = vadd.xlane.f32.xlu0 %v3161_v21  ;;  %v3118_v4 = vmul.f32 %v2983_v54, %v5206_v42  ;;  %v3120_v40 = vmul.f32 %v5238_v24, %v5206_v42  ;;  %v3033_v36 = vcombine.high %v5241_v41, %v5241_v41  ;;  %v3051_v0 = vmul.f32 %v5228_v51, %v2849_v5 }
 0x745   :  { %v3479_v3 = vcombine.low %v3471_v8, %v3478_v18  ;;  %v3173_v12 = vsel %vm3066_vm8, %v3129_v26, 0.0  ;;  %v3121_v9 = vmul.f32 %v2982_v60, %v5206_v42  ;;  %v2984_v2 = vcombine.high %v5238_v24, %v5238_v24 }
 0x746   :  { %3165 = vadd.xlane.f32.xlu1 %v3164_v16  ;;  %v3140_v56 = vsel %vm3066_vm8, %v3118_v4, 0.0  ;;  %v3146_v25 = vsel %vm3066_vm8, %v3120_v40, 0.0  ;;  %v3130_v44 = vmul.f32 %v3033_v36, %v5206_v42  ;;  %v3070_v33 = vsel %vm3066_vm8, %v3051_v0, 0.0 }
 0x747   :  { %v4104_v55 = vpack.c.bf16 %v3479_v3, %v3430_v6  ;;  %v3149_v48 = vsel %vm3066_vm8, %v3121_v9, 0.0  ;;  %v3122_v34 = vmul.f32 %v2984_v2, %v5206_v42  ;;  %v3052_v10 = vmul.f32 %v2981_v1, %v2849_v5 }
 0x748   :  { %3138 = vadd.xlane.f32.xlu0 %v3137_v61  ;;  %v3176_v11 = vsel %vm3066_vm8, %v3130_v44, 0.0  ;;  %v3050_v57 = vmul.f32 %v5214_v46, %v2849_v5  ;;  %v3053_v15 = vmul.f32 %v2983_v54, %v2849_v5  ;;  %v3059_v29 = vmul.f32 %v5220_v52, %v2849_v5 }
 0x749   :  { %4105 = vmatprep.subr.bf16.mxu1 %v4104_v55  ;;  %v3152_v51 = vsel %vm3066_vm8, %v3122_v34, 0.0  ;;  %v3073_v23 = vsel %vm3066_vm8, %v3052_v10, 0.0  ;;  %v3054_v31 = vmul.f32 %v5225_v7, %v2849_v5  ;;  %v3060_v14 = vmul.f32 %v5256_v63, %v2849_v5 }
 0x74a   :  { %3171 = vadd.xlane.f32.xlu1 %v3170_v35  ;;  %4107 = vmatpush3.bf16.msra.mxu1 %v4104_v55  ;;  %v3067_v17 = vsel %vm3066_vm8, %v3050_v57, 0.0  ;;  %v3076_v42 = vsel %vm3066_vm8, %v3053_v15, 0.0  ;;  %v3094_v39 = vsel %vm3066_vm8, %v3059_v29, 0.0  ;;  %v3055_v1 = vmul.f32 %v5238_v24, %v2849_v5 }
 0x74b   :  { %v3079_v46 = vsel %vm3066_vm8, %v3054_v31, 0.0  ;;  %v3097_v38 = vsel %vm3066_vm8, %v3060_v14, 0.0  ;;  %v3058_v52 = vmul.f32 %v5210_v58, %v2849_v5  ;;  %v3061_v7 = vmul.f32 %v5271_v59, %v2849_v5 }
 0x74c   :  { %3174 = vadd.xlane.f32.xlu0 %v3173_v12  ;;  %v3082_v37 = vsel %vm3066_vm8, %v3055_v1, 0.0  ;;  %v3056_v13 = vmul.f32 %v2982_v60, %v2849_v5  ;;  %v3062_v28 = vmul.f32 %v5217_v22, %v2849_v5  ;;  %v3064_v47 = vmul.f32 %v5296_v30, %v2849_v5 }
 0x74d   :  { %v3091_v43 = vsel %vm3066_vm8, %v3058_v52, 0.0  ;;  %v3100_v63 = vsel %vm3066_vm8, %v3061_v7, 0.0  ;;  %v3063_v45 = vmul.f32 %v5241_v41, %v2849_v5  ;;  %v3057_v53 = vmul.f32 %v2984_v2, %v2849_v5 }
 0x74e   :  { %3141 = vadd.xlane.f32.xlu1 %v3140_v56  ;;  %v3085_v24 = vsel %vm3066_vm8, %v3056_v13, 0.0  ;;  %v3103_v58 = vsel %vm3066_vm8, %v3062_v28, 0.0  ;;  %v3109_v59 = vsel %vm3066_vm8, %v3064_v47, 0.0  ;;  %v3065_v19 = vmul.f32 %v3033_v36, %v2849_v5 }
 0x74f   :  { %v3106_v21 = vsel %vm3066_vm8, %v3063_v45, 0.0  ;;  %v3088_v22 = vsel %vm3066_vm8, %v3057_v53, 0.0 }
 0x750   :  { %3150 = vadd.xlane.f32.xlu0 %v3149_v48  ;;  %v3112_v6 = vsel %vm3066_vm8, %v3065_v19, 0.0 }
 0x752   :  { %3147 = vadd.xlane.f32.xlu1 %v3146_v25 }
 0x754   :  { %3071 = vadd.xlane.f32.xlu0 %v3070_v33 }
 0x756   :  { %3177 = vadd.xlane.f32.xlu1 %v3176_v11 }
 0x758   :  { %3153 = vadd.xlane.f32.xlu0 %v3152_v51 }
 0x75a   :  { %3074 = vadd.xlane.f32.xlu1 %v3073_v23 }
 0x75c   :  { %3068 = vadd.xlane.f32.xlu0 %v3067_v17 }
 0x75e   :  { %3077 = vadd.xlane.f32.xlu1 %v3076_v42 }
 0x760   :  { %3095 = vadd.xlane.f32.xlu0 %v3094_v39 }
 0x762   :  { %3080 = vadd.xlane.f32.xlu1 %v3079_v46 }
 0x764   :  { %3098 = vadd.xlane.f32.xlu0 %v3097_v38 }
 0x766   :  { %3083 = vadd.xlane.f32.xlu1 %v3082_v37 }
 0x768   :  { %3092 = vadd.xlane.f32.xlu0 %v3091_v43 }
 0x76a   :  { %3101 = vadd.xlane.f32.xlu1 %v3100_v63 }
 0x76c   :  { %3086 = vadd.xlane.f32.xlu0 %v3085_v24 }
 0x76e   :  { %3104 = vadd.xlane.f32.xlu1 %v3103_v58 }
 0x770   :  { %3110 = vadd.xlane.f32.xlu0 %v3109_v59 }
 0x772   :  { %3107 = vadd.xlane.f32.xlu1 %v3106_v21 }
 0x774   :  { %3089 = vadd.xlane.f32.xlu0 %v3088_v22 }
 0x776   :  { %3113 = vadd.xlane.f32.xlu1 %v3112_v6 }
 0x7c5   :  { %v3157_v30 = vpop.xlane.xlu0 %3156 }
 0x7c7   :  { %v3169_v8 = vpop.xlane.xlu1 %3168 }
 0x7c8   :  { %v3215_v15 = vrot.slane %v3169_v8, 4 }
 0x7c9   :  { %v3133_v18 = vpop.xlane.xlu0 %3132 }
 0x7cb   :  { %v3136_v16 = vpop.xlane.xlu1 %3135 }
 0x7cc   :  { %v3195_v55 = vrot.slane %v3136_v16, 7 }
 0x7cd   :  { %v3160_v41 = vpop.xlane.xlu0 %3159 }
 0x7ce   :  { %v3209_v12 = vrot.slane %v3160_v41, 7  ;;  %v3196_v36 = vsel %vm659_vm2, %v3195_v55, %v3133_v18 }
 0x7cf   :  { %v3145_v50 = vpop.xlane.xlu1 %3144 }
 0x7d0   :  { %v3210_v0 = vsel %vm659_vm2, %v3209_v12, %v3157_v30  ;;  %v3201_v33 = vrot.slane %v3145_v50, 4 }
 0x7d1   :  { %v3163_v54 = vpop.xlane.xlu0 %3162 }
 0x7d2   :  { %v3211_v56 = vrot.slane %v3163_v54, 6 }
 0x7d3   :  { %v3166_v3 = vpop.xlane.xlu1 %3165 }
 0x7d4   :  { %v3213_v2 = vrot.slane %v3166_v3, 5  ;;  %v3212_v34 = vsel %vm661_vm3, %v3211_v56, %v3210_v0 }
 0x7d5   :  { %v3139_v61 = vpop.xlane.xlu0 %3138 }
 0x7d6   :  { %v3197_v35 = vrot.slane %v3139_v61, 6  ;;  %v3214_v51 = vsel %vm663_vm4, %v3213_v2, %v3212_v34 }
 0x7d7   :  { %v3172_v26 = vpop.xlane.xlu1 %3171  ;;  %v3216_v39 = vsel %vm665_vm5, %v3215_v15, %v3214_v51 }
 0x7d8   :  { %v3198_v5 = vsel %vm661_vm3, %v3197_v35, %v3196_v36  ;;  %v3217_v57 = vrot.slane %v3172_v26, 3 }
 0x7d9   :  { %v3175_v60 = vpop.xlane.xlu0 %3174 }
 0x7da   :  { %v3219_v14 = vrot.slane %v3175_v60, 2  ;;  %v3218_v1 = vsel %vm667_vm6, %v3217_v57, %v3216_v39 }
 0x7db   :  { %v3142_v4 = vpop.xlane.xlu1 %3141 }
 0x7dc   :  { %v3199_v9 = vrot.slane %v3142_v4, 5  ;;  %v3220_v13 = vsel %vm669_vm7, %v3219_v14, %v3218_v1 }
 0x7dd   :  { %v3151_v40 = vpop.xlane.xlu0 %3150 }
 0x7de   :  { %v3200_v25 = vsel %vm663_vm4, %v3199_v9, %v3198_v5  ;;  %v3205_v17 = vrot.slane %v3151_v40, 2 }
 0x7df   :  { %v3148_v48 = vpop.xlane.xlu1 %3147  ;;  %v3202_v10 = vsel %vm665_vm5, %v3201_v33, %v3200_v25 }
 0x7e0   :  { %v3203_v44 = vrot.slane %v3148_v48, 3 }
 0x7e1   :  { %v3072_v11 = vpop.xlane.xlu0 %3071 }
 0x7e2   :  { %v3204_v23 = vsel %vm667_vm6, %v3203_v44, %v3202_v10  ;;  %v3284_v38 = vrot.slane %v3072_v11, 7 }
 0x7e3   :  { %v3178_v29 = vpop.xlane.xlu1 %3177  ;;  %v3206_v46 = vsel %vm669_vm7, %v3205_v17, %v3204_v23 }
 0x7e4   :  { %v3221_v52 = vrot.slane %v3178_v29, 1 }
 0x7e5   :  { %v3154_v42 = vpop.xlane.xlu0 %3153 }
 0x7e6   :  { %v3207_v31 = vrot.slane %v3154_v42, 1  ;;  %v3222_v63 = vsel %vm5459_vm14, %v3221_v52, %v3220_v13 }
 0x7e7   :  { %v3075_v19 = vpop.xlane.xlu1 %3074 }
 0x7e8   :  { %v3208_v37 = vsel %vm5458_vm13, %v3207_v31, %v3206_v46  ;;  %v3286_v16 = vrot.slane %v3075_v19, 6 }
 0x7e9   :  { %v3069_v7 = vpop.xlane.xlu0 %3068  ;;  %3225 = vxpose.xlu0.b32.start [1/2] (short) (narrow) %v3208_v37, 8 }
 0x7ea   :  { %v3285_v43 = vsel %vm659_vm2, %v3284_v38, %v3069_v7 }
 0x7eb   :  { %v3078_v22 = vpop.xlane.xlu1 %3077  ;;  %v3287_v55 = vsel %vm661_vm3, %v3286_v16, %v3285_v43 }
 0x7ec   :  { %v3288_v50 = vrot.slane %v3078_v22, 5 }
 0x7ed   :  { %3226 = vxpose.xlu0.b32.end [2/2] (short) (narrow) %v3222_v63, 8  ;;  %v3096_v28 = vpop.xlane.xlu0 %3095 }
 0x7ee   :  { %v3298_v54 = vrot.slane %v3096_v28, 7  ;;  %v3289_v9 = vsel %vm663_vm4, %v3288_v50, %v3287_v55 }
 0x7ef   :  { %v3081_v6 = vpop.xlane.xlu1 %3080 }
 0x7f0   :  { %v3290_v3 = vrot.slane %v3081_v6, 4  ;;  %v4253_v6 = vmov 0.0|0.0  }
 0x7f1   :  { %v3099_v24 = vpop.xlane.xlu0 %3098  ;;  %4108 = vmatprep.subr.bf16.mxu1 %v4253_v6 }
 0x7f2   :  { %v3300_v35 = vrot.slane %v3099_v24, 6  ;;  %v3291_v36 = vsel %vm665_vm5, %v3290_v3, %v3289_v9 }
 0x7f3   :  { %v3084_v30 = vpop.xlane.xlu1 %3083 }
 0x7f4   :  { %v3292_v61 = vrot.slane %v3084_v30, 3  ;;  %v4255_v30 = vmov 0.0  }
 0x7f5   :  { %v3093_v47 = vpop.xlane.xlu0 %3092 }
 0x7f6   :  { %v3299_v26 = vsel %vm659_vm2, %v3298_v54, %v3093_v47  ;;  %v3293_v0 = vsel %vm667_vm6, %v3292_v61, %v3291_v36 }
 0x7f7   :  { %v3102_v8 = vpop.xlane.xlu1 %3101  ;;  %v3301_v5 = vsel %vm661_vm3, %v3300_v35, %v3299_v26 }
 0x7f8   :  { %v3302_v60 = vrot.slane %v3102_v8, 5 }
 0x7f9   :  { %v3087_v58 = vpop.xlane.xlu0 %3086 }
 0x7fa   :  { %v3294_v4 = vrot.slane %v3087_v58, 2  ;;  %v3303_v2 = vsel %vm663_vm4, %v3302_v60, %v3301_v5 }
 0x7fb   :  { %v3105_v18 = vpop.xlane.xlu1 %3104 }
 0x7fc   :  { %v3304_v12 = vrot.slane %v3105_v18, 4  ;;  %v3295_v25 = vsel %vm669_vm7, %v3294_v4, %v3293_v0  ;;  %v3891_v4 = vld [vmem:[%s5455_s10] ss:$0 sm:$0xff] }
 0x7fd   :  { %v3111_v45 = vpop.xlane.xlu0 %3110 }
 0x7fe   :  { %v3305_v44 = vsel %vm665_vm5, %v3304_v12, %v3303_v2  ;;  %v3308_v10 = vrot.slane %v3111_v45, 2 }
 0x7ff   :  { %v3108_v41 = vpop.xlane.xlu1 %3107 }
 0x800   :  { %v3306_v56 = vrot.slane %v3108_v41, 3 }
 0x801   :  { %v3090_v59 = vpop.xlane.xlu0 %3089 }
 0x802   :  { %v3296_v40 = vrot.slane %v3090_v59, 1  ;;  %v3307_v33 = vsel %vm667_vm6, %v3306_v56, %v3305_v44 }
 0x803   :  { %v3114_v48 = vpop.xlane.xlu1 %3113  ;;  %v3309_v51 = vsel %vm669_vm7, %v3308_v10, %v3307_v33 }
 0x804   :  { %v3310_v34 = vrot.slane %v3114_v48, 1  ;;  %v3297_v11 = vsel %vm5460_vm15, %v3296_v40, %v3295_v25 }
 0x806   :  { %v3311_v57 = vsel %vm5461_vm0, %v3310_v34, %v3309_v51 }
 0x869   :  { %v3241_v53 = vpop.trf.xlu0 }
 0x86a   :  { %v3260_v21 = vrot.slane %v3241_v53, %v4753_v62 }
 0x86c   :  { %3262 = vbcast.lane.b32.xlu1 %v3260_v21, 256 }
 0x870   :  { %3266 = vbcast.lane.b32.xlu1 %v3260_v21, 264 }
 0x899   :  { %3314 = vxpose.xlu1.b32.start [1/2] (short) (narrow) %v3297_v11, 8 }
 0x89d   :  { %3315 = vxpose.xlu1.b32.end [2/2] (short) (narrow) %v3311_v57, 8 }
 0x8de   :  { %v3263_v23 = vpop.permute.xlu1 %3262 }
 0x8e2   :  { %v3267_v15 = vpop.permute.xlu1 %3266 }
 0x919   :  { %v3330_v17 = vpop.trf.xlu1 }
 0x91a   :  { %v3349_v29 = vrot.slane %v3330_v17, %v4753_v62 }
 0x91c   :  { %v3350_v42 = vadd.f32 %v3349_v29, %v3263_v23  ;;  %v3351_v31 = vadd.f32 %v3349_v29, %v3267_v15 }
 0x91e   :  { %v3354_v39 = vmul.f32 0.2, %v3350_v42  ;;  %v3355_v14 = vmul.f32 0.2, %v3351_v31  ;;  %vm3353_vm1 = vcmp.gt.f32.partialorder %v3351_v31, 0.0  ;;  %vm3352_vm12 = vcmp.gt.f32.partialorder %v3350_v42, 0.0 }
 0x920   :  { %v3357_v46 = vsel %vm3353_vm1, %v3351_v31, %v3355_v14  ;;  %v3356_v1 = vsel %vm3352_vm12, %v3350_v42, %v3354_v39 }
 0x921   :  { %v3359_v38 = vsel %vm1085_vm9, %v3357_v46, -1e+30  ;;  %v3358_v52 = vsel %vm1084_vm11, %v3356_v1, -1e+30  ;;  %vm4254_vm9 = vmmov 0   ;;  %vm5462_vm11 = vmmov %vm5461_vm0 }
 0x922   :  { %v3363_v37 = vsel %vm1106_vm10, %v3359_v38, -inf  ;;  %v3360_v7 = vsel %vm1106_vm10, %v3358_v52, -inf }
 0x923   :  { %3364 = vmax.xlane.f32.xlu1 %v3363_v37  ;;  %3361 = vmax.xlane.f32.xlu0 %v3360_v7 }
 0x9b0   :  { %v3365_v62 = vpop.xlane.xlu1 %3364  ;;  %v3362_v43 = vpop.xlane.xlu0 %3361 }
 0x9b1   :  { %v3367_v13 = vsub.f32 %v3359_v38, %v3365_v62  ;;  %v3366_v63 = vsub.f32 %v3358_v52, %v3362_v43 }
 0x9b3   :  { %v3368_v28 = vmul.f32 1.442695, %v3366_v63  ;;  %v3370_v24 = vmul.f32 1.442695, %v3367_v13 }
 0x9b5   :  { %4200 = vpow2.f32 %v3368_v28 }
 0x9b6   :  { %4202 = vpow2.f32 %v3370_v24 }
 0x9bf   :  { %v4201_v47 = vpop.eup %4200 }
 0x9c0   :  { %v3372_v49 = vsel %vm1106_vm10, %v4201_v47, 0.0  ;;  %v4203_v58 = vpop.eup %4202 }
 0x9c1   :  { %3373 = vadd.xlane.f32.xlu0 %v3372_v49  ;;  %v3375_v32 = vsel %vm1106_vm10, %v4203_v58, 0.0 }
 0x9c5   :  { %3376 = vadd.xlane.f32.xlu0 %v3375_v32 }
 0xa4e   :  { %v3374_v45 = vpop.xlane.xlu0 %3373 }
 0xa4f   :  { %4204 = vrcp.f32 %v3374_v45 }
 0xa52   :  { %v3377_v59 = vpop.xlane.xlu0 %3376 }
 0xa53   :  { %4206 = vrcp.f32 %v3377_v59 }
 0xa59   :  { %v4205_v53 = vpop.eup %4204 }
 0xa5a   :  { %v3380_v21 = vmul.f32 %v4205_v53, %v4201_v47 }
 0xa5c   :  { %4038 = vmatprep.mubr.msk.f32.mxu1 %vm1106_vm10, %v3380_v21 }
 0xa5d   :  { %v4207_v19 = vpop.eup %4206 }
 0xa5e   :  { %v3381_v22 = vmul.f32 %v4207_v19, %v4203_v58 }
 0xa60   :  { %4039 = vmatmul.mubr.msk.f32.vlgmr.msra.gmra.mrb[12].mxu1 %vm1106_vm10, %v3381_v22 }
 0xa61   :  { %4045 = vmatprep.mubr.msk.f32.mxu1 %vm4254_vm9, %v4255_v30 }
 0xb33   :  { %v4040_v8 = vpop.f32.mrb[12].mxu1 }
 0xb34   :  { %v3612_v18 = vcombine.high %v4040_v8, %v4255_v30  ;;  %v3619_v16 = vrot.slane %v4040_v8, %v4350_v20  ;;  %v3554_v41 = vpop.f32.mrb[13].mxu1 }
 0xb35   :  { %v3563_v50 = vcombine.high %v3554_v41, %v4255_v30  ;;  %v3570_v54 = vrot.slane %v3554_v41, %v4350_v20 }
 0xb36   :  { %v3626_v3 = vrot.slane %v3612_v18, %v4350_v20  ;;  %v3627_v61 = vcombine.high %v3619_v16, %v4255_v30  ;;  %v3634_v26 = vrot.slane %v3619_v16, %v4355_v27 }
 0xb37   :  { %v3577_v60 = vrot.slane %v3563_v50, %v4350_v20  ;;  %v3578_v55 = vcombine.high %v3570_v54, %v4255_v30  ;;  %v3585_v35 = vrot.slane %v3570_v54, %v4355_v27 }
 0xb38   :  { %v3641_v12 = vrot.slane %v3627_v61, %v4355_v27  ;;  %v3642_v9 = vcombine.high %v3626_v3, %v4255_v30  ;;  %v3649_v56 = vrot.slane %v3626_v3, %v4355_v27  ;;  %v3657_v40 = vcombine.high %v3634_v26, %v4255_v30 }
 0xb39   :  { %v3592_v36 = vrot.slane %v3578_v55, %v4355_v27  ;;  %v3593_v5 = vcombine.high %v3577_v60, %v4255_v30  ;;  %v3675_v25 = vadd.f32 %v3891_v4, %v3634_v26  ;;  %v3600_v34 = vrot.slane %v3577_v60, %v4355_v27  ;;  %v3683_v55 = vld [vmem:[%s5447_s2] sm:$0x3]  ;;  %s3822_s2 = sshll.u32 %s4256_s24, 4  ;;  %s3823_s2 = int_to_ptr.vmem [resolvable:$true] %s3822_s2 }
 0xb3a   :  { %v3656_v48 = vrot.slane %v3642_v9, %v4355_v27  ;;  %v3658_v0 = vcombine.high %v3641_v12, %v4255_v30  ;;  %v3659_v20 = vcombine.high %v3649_v56, %v4255_v30  ;;  %v3676_v2 = vadd.f32 %v3891_v4, %v3657_v40  ;;  %s4212_s25 = scalar_lea.vmem %s3823_s2, 32  ;;  %p4217_p1 = scmp.lt.s32.totalorder %s3823_s2, %s3823_s2 }
 0xb3b   :  { %v3677_v44 = vadd.f32 %v3891_v4, %v3641_v12  ;;  %v3679_v33 = vadd.f32 %v3891_v4, %v3649_v56  ;;  %v3607_v51 = vrot.slane %v3593_v5, %v4355_v27  ;;  %v3608_v57 = vcombine.high %v3585_v35, %v4255_v30  ;;  %p4213_p0 = scmp.ne.s32.totalorder %s3823_s2, %s4212_s25  ;;  %p4218_p2 = scmp.lt.s32.totalorder %s4212_s25, %s4212_s25 }
 0xb3c   :  { %v3660_v11 = vcombine.high %v3656_v48, %v4255_v30  ;;  %v3678_v10 = vadd.f32 %v3891_v4, %v3658_v0  ;;  %v3680_v23 = vadd.f32 %v3891_v4, %v3659_v20  ;;  %v3714_v15 = vrot.slane %v3676_v2, 7 }
 0xb3d   :  { %v3716_v17 = vrot.slane %v3677_v44, 6  ;;  %v3609_v29 = vcombine.high %v3592_v36, %v4255_v30  ;;  %v3681_v42 = vadd.f32 %v3891_v4, %v3656_v48  ;;  %v3720_v46 = vrot.slane %v3679_v33, 4  ;;  %p4219_p3 = por %p4218_p2, %p4217_p1 }
 0xb3e   :  { %v3718_v31 = vrot.slane %v3678_v10, 5  ;;  %v3682_v39 = vadd.f32 %v3891_v4, %v3660_v11  ;;  %v3715_v14 = vsel %vm659_vm2, %v3714_v15, %v3675_v25  ;;  %v3610_v1 = vcombine.high %v3600_v34, %v4255_v30 }
 0xb3f   :  { %v3717_v38 = vsel %vm661_vm3, %v3716_v17, %v3715_v14  ;;  %v3611_v52 = vcombine.high %v3607_v51, %v4255_v30  ;;  %v3668_v37 = vadd.f32 %v3891_v4, %v3608_v57  ;;  %v3669_v7 = vadd.f32 %v3891_v4, %v3592_v36  ;;  %p4220_p4 = pnand %p4219_p3, %p4213_p0 }
 0xb40   :  { %v3719_v62 = vsel %vm663_vm4, %v3718_v31, %v3717_v38  ;;  %v3722_v27 = vrot.slane %v3680_v23, 3  ;;  %v3670_v43 = vadd.f32 %v3891_v4, %v3609_v29  ;;  %v3671_v13 = vadd.f32 %v3891_v4, %v3600_v34 }
 0xb41   :  { %v3721_v63 = vsel %vm665_vm5, %v3720_v46, %v3719_v62  ;;  %v3667_v28 = vadd.f32 %v3891_v4, %v3585_v35  ;;  %v3672_v24 = vadd.f32 %v3891_v4, %v3610_v1  ;;  %v3700_v47 = vrot.slane %v3668_v37, 7 }
 0xb42   :  { %v3724_v49 = vrot.slane %v3681_v42, 2  ;;  %v3673_v58 = vadd.f32 %v3891_v4, %v3607_v51  ;;  %v3702_v32 = vrot.slane %v3669_v7, 6  ;;  %v3704_v45 = vrot.slane %v3670_v43, 5 }
 0xb43   :  { %v3674_v59 = vadd.f32 %v3891_v4, %v3611_v52  ;;  %v3701_v53 = vsel %vm659_vm2, %v3700_v47, %v3667_v28  ;;  %v3723_v21 = vsel %vm667_vm6, %v3722_v27, %v3721_v63  ;;  %v3706_v22 = vrot.slane %v3671_v13, 4  ;;  %vm5463_vm2 = vmmov %vm5461_vm0 }
 0xb44   :  { %v3703_v19 = vsel %vm661_vm3, %v3702_v32, %v3701_v53  ;;  %v3725_v6 = vsel %vm669_vm7, %v3724_v49, %v3723_v21  ;;  %v3726_v30 = vrot.slane %v3682_v39, 1  ;;  %v3708_v18 = vrot.slane %v3672_v24, 3 }
 0xb45   :  { %v3705_v8 = vsel %vm663_vm4, %v3704_v45, %v3703_v19  ;;  %v3710_v41 = vrot.slane %v3673_v58, 2  ;;  %v3712_v50 = vrot.slane %v3674_v59, 1  ;;  %vm3803_vm3 = vcmask 25600  }
 0xb46   :  { %v3707_v16 = vsel %vm665_vm5, %v3706_v22, %v3705_v8  ;;  %v3727_v3 = vsel %vm5462_vm11, %v3726_v30, %v3725_v6 }
 0xb47   :  { %v3709_v54 = vsel %vm667_vm6, %v3708_v18, %v3707_v16 }
 0xb48   :  { %v3711_v61 = vsel %vm669_vm7, %v3710_v41, %v3709_v54 }
 0xb49   :  { %v3713_v26 = vsel %vm5463_vm2, %v3712_v50, %v3711_v61 }
 0xb4a   :  { %v4109_v60 = vpack.c.bf16 %v3727_v3, %v3713_v26 }
 0xb4c   :  { %4110 = vmatpush3.bf16.msra.mxu1 %v4109_v60 }
 0xb4f   :  { %4046 = vmatmul.mubr.msk.f32.vlgmr.msra.gmra.mrb[14].mxu1 %vm1106_vm10, %v3683_v55 }
 0xc22   :  { %v3799_v35 = vpop.f32.mrb[14].mxu1 }
 0xc23   :  { %v4047_v4 = vpop.f32.mrb[15].mxu1  ;;  %v3804_v12 = vsel %vm3803_vm3, %v3799_v35, -inf }
 0xc24   :  { %3805 = vmax.xlane.f32.xlu0 %v3804_v12 }
 0xcb1   :  { %v3806_v9 = vpop.xlane.xlu0 %3805 }
 0xcb2   :  { %v3807_v56 = vsub.f32 %v3799_v35, %v3806_v9 }
 0xcb4   :  { %v3808_v40 = vmul.f32 1.442695, %v3807_v56 }
 0xcb6   :  { %4208 = vpow2.f32 %v3808_v40 }
 0xcc0   :  { %v4209_v36 = vpop.eup %4208 }
 0xcc1   :  { %v3810_v5 = vsel %vm3803_vm3, %v4209_v36, 0.0 }
 0xcc2   :  { %3811 = vadd.xlane.f32.xlu0 %v3810_v5 }
 0xd4f   :  { %v3812_v48 = vpop.xlane.xlu0 %3811 }
 0xd50   :  { %4210 = vrcp.f32 %v3812_v48 }
 0xd5a   :  { %v4211_v0 = vpop.eup %4210 }
 0xd5b   :  { %v3814_v20 = vmul.f32 %v4211_v0, %v4209_v36 }
 0xd5d   :  { %3815 = vst.msk [vmem:[#allocation2] sm:$0x3] %vm3803_vm3, %v3814_v20 }
 0xd5e   :  { %4223 = shalt.err (!%p4220_p4)
}
 0xd5f   :  { %s4224_s28 = scalar_lea.hbm %s5456_s11, 32 }
 0xd60   :  { %p4225_p5 = scmp.ne.s32.totalorder %s5456_s11, %s4224_s28  ;;  %p4228_p6 = scmp.lt.u32.totalorder %s4224_s28, %s5456_s11 }
 0xd62   :  { %p4230_p7 = pnand %p4228_p6, %p4225_p5 }
 0xd64   :  { %4233 = shalt.err (!%p4230_p7)
}
 0xd65   :  { %3825 = dma.vmem_to_hbm [thread:$0]  %s3823_s2, 32, %s5456_s11, [#allocation3]  }
 0xd66   :  { %4234 = dma.done.wait [#allocation3], 32  }
 0xd67   :  { %4235 = vsyncadd [#allocation3], 4294967264 }
 0xd68   :  { %3829 = vsyncpa [#allocation3], 1 }

</bundles_post_ra>
